<compile_context>
chip_gen: v7x
topology: tpu7x:2x2x1
jax: 0.10.0
libtpu: 0.0.40
codegen_flags: <defaults>
</compile_context>

<pallas_src>
from functools import partial

import jax
import jax.numpy as jnp
from jax.experimental import pallas as pl
from jax.experimental.pallas import tpu as pltpu


def _round_up(n, m):
    return ((n + m - 1) // m) * m


# --------------------------------------------------------------------------
# Kernel
# --------------------------------------------------------------------------
def multibranch_kernel(x_ref, p_ref, out_ref, *, layer_meta, slope, compute_dtype):
    """x_ref   : (tb, sum_in)      one batch tile (compute_dtype)
       p_ref   : (rows, cols)      all fused layers packed (compute_dtype)
       out_ref : (out_pad, tb)     feature-major, lane-dense along batch (f32)
       layer_meta: tuple of (K_l, N_l, col_off_l) static ints."""
    # Masking on the original input, in f32 (upcast is a no-op for f32 input).
    x = x_ref[...].astype(jnp.float32)
    nan_mask = jnp.isnan(x)
    zero_mask = x == 0.0
    h = jnp.where(nan_mask, 0.0, x)
    h = jnp.where(zero_mask, 0.01, h)

    n_layers = len(layer_meta)
    for l, (k, n, off) in enumerate(layer_meta):
        w = p_ref[:k, off:off + n]                       # (k, n) static Ref slice
        b = p_ref[k:k + 1, off:off + n].astype(jnp.float32)  # (1, n)
        z = jnp.dot(h.astype(compute_dtype), w,
                    preferred_element_type=jnp.float32) + b
        if l < n_layers - 1:                             # LeakyReLU except last layer
            z = jnp.maximum(z, slope * z)
        h = z

    # (tb, out_pad) -> (out_pad, tb): XLU transpose; store is lane-dense.
    out_ref[...] = h.T.astype(out_ref.dtype)


# --------------------------------------------------------------------------
# Host-side parameter fusion / packing
# --------------------------------------------------------------------------
def pack_params(params, input_sizes, hidden_sizes, output_size, *,
                compute_dtype=jnp.float32, out_sublane_pad=8):
    """Fuse per-branch layers into block-diagonal (W, b) pairs, pad the last
    layer's outputs to `out_sublane_pad` sublanes, and pack ALL layers into a
    single contiguous (rows, cols) array (one DMA, resident across the grid).

    Returns (packed_array, layer_meta, out_pad, compute_dtype)."""
    nb = len(input_sizes)
    layers = []

    prev_sizes = list(input_sizes)
    for l, hsz in enumerate(hidden_sizes):
        k_tot = sum(prev_sizes)
        w_full = jnp.zeros((k_tot, nb * hsz), jnp.float32)
        b_full = jnp.zeros((1, nb * hsz), jnp.float32)
        row = 0
        for bi in range(nb):
            w_b, bias_b = params["branches"][bi][l]       # (prev_b, hsz), (1, hsz)
            w_full = w_full.at[row:row + prev_sizes[bi],
                               bi * hsz:(bi + 1) * hsz].set(w_b)
            b_full = b_full.at[:, bi * hsz:(bi + 1) * hsz].set(bias_b)
            row += prev_sizes[bi]
        layers.append((w_full, b_full))
        prev_sizes = [hsz] * nb

    (wf1, bf1), (wf2, bf2) = params["final"]
    # Fused activations are already [branch0 | branch1 | ...] == torch.cat order.
    layers.append((wf1.astype(jnp.float32), bf1.astype(jnp.float32)))

    out_pad = _round_up(output_size, out_sublane_pad)
    wf2_p = jnp.zeros((wf2.shape[0], out_pad), jnp.float32).at[:, :output_size].set(wf2)
    bf2_p = jnp.zeros((1, out_pad), jnp.float32).at[:, :output_size].set(bf2)
    layers.append((wf2_p, bf2_p))

    # Pack: per layer, columns [off, off+N); rows [0,K) = W, row K = bias.
    k_max = max(w.shape[0] for w, _ in layers)
    rows = _round_up(k_max + 1, 8)
    cols = _round_up(sum(w.shape[1] for w, _ in layers), 128)
    packed = jnp.zeros((rows, cols), jnp.float32)
    meta = []
    off = 0
    for w, b in layers:
        k, n = w.shape
        packed = packed.at[:k, off:off + n].set(w)
        packed = packed.at[k, off:off + n].set(b[0])
        meta.append((k, n, off))
        off += n
    return packed.astype(compute_dtype), tuple(meta), out_pad, jnp.dtype(compute_dtype)


# --------------------------------------------------------------------------
# Wrappers
# --------------------------------------------------------------------------
def _choose_tile_batch(batch, max_tb=1024):
    # Small batches: a single tile covering the (sublane-padded) batch —
    # launch/prologue dominates anyway.  Larger batches: >= 2 tiles so both
    # v7x TensorCores get a "parallel" grid step, each tile a multiple of 128
    # (lane-dense feature-major store), capped at max_tb (VMEM is nowhere
    # near a constraint at these feature widths, even on v7x's 64 MiB).
    if batch <= 256:
        return _round_up(batch, 8)
    return min(max_tb, _round_up((batch + 1) // 2, 128))


def multibranch_forward_batched(inputs, packed, *, output_size, slope,
                                tile_batch=None):
    """inputs: list of per-branch arrays, each (batch, in_b).
    Returns (batch, output_size) — MultiBranchNet forward applied per row."""
    pparams, layer_meta, out_pad, compute_dtype = packed
    batch = inputs[0].shape[0]
    x = jnp.concatenate(
        [xi.reshape(batch, -1) for xi in inputs], axis=1).astype(compute_dtype)
    sum_in = x.shape[1]

    tb = tile_batch if tile_batch is not None else _choose_tile_batch(batch)
    padded_batch = _round_up(batch, tb)
    if padded_batch != batch:
        # Padded rows are zero -> the zero-mask turns them into 0.01 and they
        # produce garbage outputs; they are sliced off below.  Do NOT fuse any
        # reduction over the padded output without masking them.
        x = jnp.pad(x, ((0, padded_batch - batch), (0, 0)))

    kernel = partial(multibranch_kernel, layer_meta=layer_meta, slope=slope,
                     compute_dtype=compute_dtype)

    out = pl.pallas_call(
        kernel,
        out_shape=jax.ShapeDtypeStruct((out_pad, padded_batch), jnp.float32),
        grid=(padded_batch // tb,),
        in_specs=[
            pl.BlockSpec((tb, sum_in), lambda i: (i, 0)),      # batch tile
            pl.BlockSpec(pparams.shape, lambda i: (0, 0)),     # resident params
        ],
        out_specs=pl.BlockSpec((out_pad, tb), lambda i: (0, i)),  # feature-major
        compiler_params=pltpu.CompilerParams(
            dimension_semantics=("parallel",)),
    )(x, pparams)

    return out[:output_size, :batch].T


def multibranch_forward(inputs, params, *, slope):
    """Single-sample forward matching torch's MultiBranchNet.forward(inputs).squeeze().
    Pure JAX on purpose: a pallas_call launch + row padding costs more than the
    whole ~14 KFLOP network at batch=1; the kernel only pays off batched."""
    batched = [x.reshape(1, -1) for x in inputs]
    return jnp.squeeze(reference_forward_batched(batched, params, slope))


# --------------------------------------------------------------------------
# Parameter init + pure-JAX reference
# --------------------------------------------------------------------------
def init_params(key, input_sizes, hidden_sizes, final_hidden, output_size):
    """Xavier-uniform weights, uniform(0, 0.2) biases; (in, out) weight layout."""
    def linear(k, fan_in, fan_out):
        k1, k2 = jax.random.split(k)
        limit = (6.0 / (fan_in + fan_out)) ** 0.5
        w = jax.random.uniform(k1, (fan_in, fan_out), jnp.float32, -limit, limit)
        b = jax.random.uniform(k2, (1, fan_out), jnp.float32, 0.0, 0.2)
        return w, b

    params = {"branches": [], "final": []}
    for in_size in input_sizes:
        layers = []
        prev = in_size
        for h in hidden_sizes:
            key, sub = jax.random.split(key)
            layers.append(linear(sub, prev, h))
            prev = h
        params["branches"].append(layers)

    concat_size = len(input_sizes) * hidden_sizes[-1]
    key, sub = jax.random.split(key)
    params["final"].append(linear(sub, concat_size, final_hidden))
    key, sub = jax.random.split(key)
    params["final"].append(linear(sub, final_hidden, output_size))
    return params


def reference_forward_batched(inputs, params, slope):
    """Pure-JAX reference mirroring the torch forward per sample (batched rows)."""
    branch_outs = []
    for x, branch in zip(inputs, params["branches"]):
        nan_mask = jnp.isnan(x)
        zero_mask = x == 0.0
        h = jnp.where(nan_mask, 0.0, x)
        h = jnp.where(zero_mask, 0.01, h)
        for (w, b) in branch:
            h = h @ w + b
            h = jnp.where(h >= 0, h, slope * h)
        branch_outs.append(h)
    combined = jnp.concatenate(branch_outs, axis=-1)   # == torch.cat(dim=0) per sample
    (wf1, bf1), (wf2, bf2) = params["final"]
    z = combined @ wf1 + bf1
    z = jnp.where(z >= 0, z, slope * z)
    return z @ wf2 + bf2


# --------------------------------------------------------------------------
if __name__ == "__main__":
    input_sizes = [8, 12, 16]
    hidden_layer_sizes = [32, 16]
    final_hidden_layer_size = 32
    output_size = 4
    slope = 0.01

    key = jax.random.PRNGKey(0)
    key, pkey = jax.random.split(key)
    params = init_params(pkey, input_sizes, hidden_layer_sizes,
                         final_hidden_layer_size, output_size)
    packed = pack_params(params, input_sizes, hidden_layer_sizes, output_size)

    def make_inputs(key, batch):
        inputs = []
        for nfeat in input_sizes:
            key, sub = jax.random.split(key)
            x = jax.random.normal(sub, (batch, nfeat), jnp.float32)
            x = x.at[:, 0].set(jnp.nan)   # exercise NaN mask  -> 0.0
            x = x.at[:, 1].set(0.0)       # exercise zero mask -> 0.01
            inputs.append(x)
        return key, inputs

    # 1) batch=256 -> one 256-row tile (grid=1)
    key, inputs = make_inputs(key, 256)
    out = jax.block_until_ready(
        multibranch_forward_batched(inputs, packed,
                                    output_size=output_size, slope=slope))
    ref = reference_forward_batched(inputs, params, slope)
    assert out.shape == (256, output_size)
    assert jnp.allclose(out, ref, atol=1e-4, rtol=1e-4), (out[:2], ref[:2])

    # 2) batch=1000 -> tb=512, grid=2 (multi-tile + batch padding path)
    key, inputs2 = make_inputs(key, 1000)
    out2 = jax.block_until_ready(
        multibranch_forward_batched(inputs2, packed,
                                    output_size=output_size, slope=slope))
    ref2 = reference_forward_batched(inputs2, params, slope)
    assert out2.shape == (1000, output_size)
    assert jnp.allclose(out2, ref2, atol=1e-4, rtol=1e-4)

    # 3) bf16-streamed variant (halves input HBM reads; v5e-friendly MXU dtype)
    packed_bf16 = pack_params(params, input_sizes, hidden_layer_sizes, output_size,
                              compute_dtype=jnp.bfloat16)
    out3 = jax.block_until_ready(
        multibranch_forward_batched(inputs, packed_bf16,
                                    output_size=output_size, slope=slope))
    assert jnp.allclose(out3, ref, atol=1e-1, rtol=1e-1)

    # 4) single-sample path (pure JAX — matches torch forward + .squeeze())
    single_inputs = [x[0] for x in inputs]
    out1 = jax.block_until_ready(
        multibranch_forward(single_inputs, params, slope=slope))
    assert out1.shape == (output_size,)
    assert jnp.allclose(out1, ref[0], atol=1e-4, rtol=1e-4), (out1, ref[0])

    print("KERNEL_OK")
</pallas_src>

<mosaic_0001>
module attributes {stable_mosaic.version = 11 : i64} {
  func.func @multibranch_kernel(%arg0: i32, %arg1: memref<256x36xf32, #tpu.memory_space<vmem>>, %arg2: memref<104x256xf32, #tpu.memory_space<vmem>>, %arg3: memref<8x256xf32, #tpu.memory_space<vmem>>) attributes {dimension_semantics = [#tpu.dimension_semantics<parallel>], iteration_bounds = array<i64: 1>, scalar_prefetch = 0 : i64, scratch_operands = 0 : i64, tpu.core_type = #tpu.core_type<tc>, window_params = [{transform_indices = @transform_0, window_bounds = array<i64: 256, 36>}, {pipeline_mode = #tpu.pipeline_mode<synchronous>, transform_indices = @transform_1, window_bounds = array<i64: 104, 256>}, {transform_indices = @transform_2, window_bounds = array<i64: 8, 256>}]} {
    %c0 = arith.constant 0 : index
    %c0_0 = arith.constant 0 : index
    %0 = vector.load %arg1[%c0, %c0_0] : memref<256x36xf32, #tpu.memory_space<vmem>>, vector<256x36xf32>
    %1 = arith.cmpf one, %0, %0 : vector<256x36xf32>
    %cst = arith.constant 0.000000e+00 : f32
    %2 = vector.broadcast %cst : f32 to vector<256x36xf32>
    %3 = arith.cmpf oeq, %0, %2 : vector<256x36xf32>
    %cst_1 = arith.constant 0.000000e+00 : f32
    %4 = vector.broadcast %cst_1 : f32 to vector<256x36xf32>
    %5 = arith.select %1, %4, %0 : vector<256x36xi1>, vector<256x36xf32>
    %cst_2 = arith.constant 0.00999999977 : f32
    %6 = vector.broadcast %cst_2 : f32 to vector<256x36xf32>
    %7 = arith.select %3, %6, %5 : vector<256x36xi1>, vector<256x36xf32>
    %c0_3 = arith.constant 0 : index
    %c0_4 = arith.constant 0 : index
    %8 = vector.load %arg2[%c0_3, %c0_4] : memref<104x256xf32, #tpu.memory_space<vmem>>, vector<36x96xf32>
    %c36 = arith.constant 36 : index
    %c0_5 = arith.constant 0 : index
    %9 = vector.load %arg2[%c36, %c0_5] : memref<104x256xf32, #tpu.memory_space<vmem>>, vector<1x96xf32>
    %cst_6 = arith.constant dense<0.000000e+00> : vector<256x96xf32>
    %10 = tpu.matmul %7, %8, %cst_6 {dimension_numbers = #tpu.dot_dimension_numbers<[1], [0], [0], [1], [0, 0, 1, 1], [], []>} : vector<256x36xf32>, vector<36x96xf32>, vector<256x96xf32> -> vector<256x96xf32>
    %11 = vector.broadcast %9 : vector<1x96xf32> to vector<256x96xf32>
    %12 = arith.addf %10, %11 : vector<256x96xf32>
    %cst_7 = arith.constant 0.00999999977 : f32
    %13 = vector.broadcast %cst_7 : f32 to vector<256x96xf32>
    %14 = arith.mulf %13, %12 : vector<256x96xf32>
    %15 = arith.maximumf %12, %14 : vector<256x96xf32>
    %c0_8 = arith.constant 0 : index
    %c96 = arith.constant 96 : index
    %16 = vector.load %arg2[%c0_8, %c96] : memref<104x256xf32, #tpu.memory_space<vmem>>, vector<96x48xf32>
    %c96_9 = arith.constant 96 : index
    %c96_10 = arith.constant 96 : index
    %17 = vector.load %arg2[%c96_9, %c96_10] : memref<104x256xf32, #tpu.memory_space<vmem>>, vector<1x48xf32>
    %cst_11 = arith.constant dense<0.000000e+00> : vector<256x48xf32>
    %18 = tpu.matmul %15, %16, %cst_11 {dimension_numbers = #tpu.dot_dimension_numbers<[1], [0], [0], [1], [0, 0, 1, 1], [], []>} : vector<256x96xf32>, vector<96x48xf32>, vector<256x48xf32> -> vector<256x48xf32>
    %19 = vector.broadcast %17 : vector<1x48xf32> to vector<256x48xf32>
    %20 = arith.addf %18, %19 : vector<256x48xf32>
    %cst_12 = arith.constant 0.00999999977 : f32
    %21 = vector.broadcast %cst_12 : f32 to vector<256x48xf32>
    %22 = arith.mulf %21, %20 : vector<256x48xf32>
    %23 = arith.maximumf %20, %22 : vector<256x48xf32>
    %c0_13 = arith.constant 0 : index
    %c144 = arith.constant 144 : index
    %24 = vector.load %arg2[%c0_13, %c144] : memref<104x256xf32, #tpu.memory_space<vmem>>, vector<48x32xf32>
    %c48 = arith.constant 48 : index
    %c144_14 = arith.constant 144 : index
    %25 = vector.load %arg2[%c48, %c144_14] : memref<104x256xf32, #tpu.memory_space<vmem>>, vector<1x32xf32>
    %cst_15 = arith.constant dense<0.000000e+00> : vector<256x32xf32>
    %26 = tpu.matmul %23, %24, %cst_15 {dimension_numbers = #tpu.dot_dimension_numbers<[1], [0], [0], [1], [0, 0, 1, 1], [], []>} : vector<256x48xf32>, vector<48x32xf32>, vector<256x32xf32> -> vector<256x32xf32>
    %27 = vector.broadcast %25 : vector<1x32xf32> to vector<256x32xf32>
    %28 = arith.addf %26, %27 : vector<256x32xf32>
    %cst_16 = arith.constant 0.00999999977 : f32
    %29 = vector.broadcast %cst_16 : f32 to vector<256x32xf32>
    %30 = arith.mulf %29, %28 : vector<256x32xf32>
    %31 = arith.maximumf %28, %30 : vector<256x32xf32>
    %c0_17 = arith.constant 0 : index
    %c176 = arith.constant 176 : index
    %32 = vector.load %arg2[%c0_17, %c176] : memref<104x256xf32, #tpu.memory_space<vmem>>, vector<32x8xf32>
    %c32 = arith.constant 32 : index
    %c176_18 = arith.constant 176 : index
    %33 = vector.load %arg2[%c32, %c176_18] : memref<104x256xf32, #tpu.memory_space<vmem>>, vector<1x8xf32>
    %cst_19 = arith.constant dense<0.000000e+00> : vector<256x8xf32>
    %34 = tpu.matmul %31, %32, %cst_19 {dimension_numbers = #tpu.dot_dimension_numbers<[1], [0], [0], [1], [0, 0, 1, 1], [], []>} : vector<256x32xf32>, vector<32x8xf32>, vector<256x8xf32> -> vector<256x8xf32>
    %35 = vector.broadcast %33 : vector<1x8xf32> to vector<256x8xf32>
    %36 = arith.addf %34, %35 : vector<256x8xf32>
    %37 = tpu.transpose %36, [1, 0] : vector<256x8xf32> -> vector<8x256xf32>
    %c0_20 = arith.constant 0 : index
    %c0_21 = arith.constant 0 : index
    %38 = vector.load %arg3[%c0_20, %c0_21] : memref<8x256xf32, #tpu.memory_space<vmem>>, vector<8x256xf32>
    tpu.vector_store %arg3[%c0_20, %c0_21], %37 {strides = array<i32>} : memref<8x256xf32, #tpu.memory_space<vmem>>, vector<8x256xf32>,
    return
  }
  func.func @transform_0(%arg0: i32) -> (i32, i32) {
    %c0_i32 = arith.constant 0 : i32
    %c0_i32_0 = arith.constant 0 : i32
    return %arg0, %c0_i32 : i32, i32
  }
  func.func @transform_1(%arg0: i32) -> (i32, i32) {
    %c0_i32 = arith.constant 0 : i32
    %c0_i32_0 = arith.constant 0 : i32
    %c0_i32_1 = arith.constant 0 : i32
    return %c0_i32, %c0_i32_0 : i32, i32
  }
  func.func @transform_2(%arg0: i32) -> (i32, i32) {
    %c0_i32 = arith.constant 0 : i32
    %c0_i32_0 = arith.constant 0 : i32
    return %c0_i32, %arg0 : i32, i32
  }
}

</mosaic_0001>

<bundles_post_ra>
// kernel: tpu_custom_call.1
= control target key start
LH: loop header
LB: loop body
LE: loop exit
PB: predicated region body
PF: predicated region fallthrough
CT: control target
= control target key end

     0   :  { %vm178_vm2 = vcmask 293888   ;;  %vm275_vm5 = vcmask 1043456   ;;  %s3201_s0 = inlined_call_operand.vmem [shape: f32[256,36], index: 0, kind: input, shape index: {}]   ;;  %s3202_s1 = inlined_call_operand.vmem [shape: f32[104,256], index: 1, kind: input, shape index: {}]   ;;  %s3203_s2 = inlined_call_operand.hbm [shape: f32[8,256], index: 2, kind: output, shape index: {}]  }
   0x1   :  { %v2653_v0 = vld [vmem:[%s3202_s1] sm:$0xff]  ;;  %v2658_v1 = vld [vmem:[%s3202_s1 + $0x10] sm:$0xff]  ;;  %v13_v7 = vld [vmem:[%s3201_s0 + $0x8] sm:$0xff] }
   0x2   :  { %v2663_v2 = vld [vmem:[%s3202_s1 + $0x20] sm:$0xff]  ;;  %v2462_v3 = vpack.c.bf16 %v2658_v1, %v2653_v0  ;;  %v2670_v4 = vld [vmem:[%s3202_s1 + $0x30] sm:$0xff]  ;;  %vm45_vm3 = vcmp.ne.f32.partialorder %v13_v7, %v13_v7  ;;  %v15_v11 = vld [vmem:[%s3201_s0 + $0x18] sm:$0xff]  ;;  %vm77_vm6 = vcmp.eq.f32.partialorder %v13_v7, 0.0 }
   0x3   :  { %v12_v5 = vld [vmem:[%s3201_s0] sm:$0xff]  ;;  %v2466_v6 = vpack.c.bf16 %v2670_v4, %v2663_v2  ;;  %v14_v8 = vld [vmem:[%s3201_s0 + $0x10] sm:$0xff]  ;;  %v109_v14 = vsel %vm45_vm3, 0.0, %v13_v7  ;;  %vm47_vm8 = vcmp.ne.f32.partialorder %v15_v11, %v15_v11  ;;  %v17_v16 = vld [vmem:[%s3201_s0 + $0x28] sm:$0xff]  ;;  %vm79_vm10 = vcmp.eq.f32.partialorder %v15_v11, 0.0 }
   0x4   :  { %vm44_vm0 = vcmp.ne.f32.partialorder %v12_v5, %v12_v5  ;;  %vm76_vm1 = vcmp.eq.f32.partialorder %v12_v5, 0.0  ;;  %2463 = vmatprep.subr.bf16.mxu0 %v2462_v3  ;;  %vm46_vm4 = vcmp.ne.f32.partialorder %v14_v8, %v14_v8  ;;  %v176_v12 = vld [vmem:[%s3202_s1 + $0x40] sm:$0xf]  ;;  %vm78_vm7 = vcmp.eq.f32.partialorder %v14_v8, 0.0  ;;  %v18_v18 = vld [vmem:[%s3201_s0 + $0x30] sm:$0xff]  ;;  %v19_v22 = vld [vmem:[%s3201_s0 + $0x38] sm:$0xff] }
   0x5   :  { %v108_v9 = vsel %vm44_vm0, 0.0, %v12_v5  ;;  %2465 = vmatpush3.bf16.msra.mxu0 %v2462_v3  ;;  %v16_v13 = vld [vmem:[%s3201_s0 + $0x20] sm:$0xff]  ;;  %v110_v15 = vsel %vm46_vm4, 0.0, %v14_v8  ;;  %v141_v17 = vsel %vm77_vm6, 0.01, %v109_v14  ;;  %v111_v20 = vsel %vm47_vm8, 0.0, %v15_v11 }
   0x6   :  { %v140_v10 = vsel %vm76_vm1, 0.01, %v108_v9  ;;  %2467 = vmatprep.subr.bf16.mxu0 %v2466_v6  ;;  %vm48_vm9 = vcmp.ne.f32.partialorder %v16_v13, %v16_v13  ;;  %v142_v19 = vsel %vm78_vm7, 0.01, %v110_v15  ;;  %vm80_vm11 = vcmp.eq.f32.partialorder %v16_v13, 0.0  ;;  %v20_v24 = vld [vmem:[%s3201_s0 + $0x40] sm:$0xff] }
   0x7   :  { %2226 = vmatprep.mubr.msk.f32.mxu0 %vm178_vm2, %v140_v10  ;;  %v112_v21 = vsel %vm48_vm9, 0.0, %v16_v13  ;;  %vm49_vm12 = vcmp.ne.f32.partialorder %v17_v16, %v17_v16  ;;  %vm50_vm13 = vcmp.ne.f32.partialorder %v18_v18, %v18_v18  ;;  %v143_v23 = vsel %vm79_vm10, 0.01, %v111_v20  ;;  %v21_v28 = vld [vmem:[%s3201_s0 + $0x48] sm:$0xff]  ;;  %v22_v30 = vld [vmem:[%s3201_s0 + $0x50] sm:$0xff]  ;;  %v23_v34 = vld [vmem:[%s3201_s0 + $0x58] sm:$0xff] }
   0x8   :  { %v144_v25 = vsel %vm80_vm11, 0.01, %v112_v21  ;;  %vm81_vm14 = vcmp.eq.f32.partialorder %v17_v16, 0.0  ;;  %v113_v26 = vsel %vm49_vm12, 0.0, %v17_v16  ;;  %vm82_vm15 = vcmp.eq.f32.partialorder %v18_v18, 0.0  ;;  %v24_v36 = vld [vmem:[%s3201_s0 + $0x60] sm:$0xff] }
   0x9   :  { %2469 = vmatpush3.bf16.msra.mxu0 %v2466_v6  ;;  %v114_v27 = vsel %vm50_vm13, 0.0, %v18_v18  ;;  %vm51_vm0 = vcmp.ne.f32.partialorder %v19_v22, %v19_v22  ;;  %vm52_vm1 = vcmp.ne.f32.partialorder %v20_v24, %v20_v24  ;;  %v145_v29 = vsel %vm81_vm14, 0.01, %v113_v26  ;;  %v25_v40 = vld [vmem:[%s3201_s0 + $0x68] sm:$0xff]  ;;  %v26_v42 = vld [vmem:[%s3201_s0 + $0x70] sm:$0xff]  ;;  %v27_v46 = vld [vmem:[%s3201_s0 + $0x78] sm:$0xff] }
   0xa   :  { %2224 = vmatprep.subr.msk.mxu0 %vm275_vm5, %v176_v12  ;;  %v146_v31 = vsel %vm82_vm15, 0.01, %v114_v27  ;;  %vm83_vm3 = vcmp.eq.f32.partialorder %v19_v22, 0.0  ;;  %v115_v32 = vsel %vm51_vm0, 0.0, %v19_v22  ;;  %vm84_vm4 = vcmp.eq.f32.partialorder %v20_v24, 0.0  ;;  %v28_v48 = vld [vmem:[%s3201_s0 + $0x80] sm:$0xff] }
   0xb   :  { %v116_v33 = vsel %vm52_vm1, 0.0, %v20_v24  ;;  %vm54_vm6 = vcmp.ne.f32.partialorder %v22_v30, %v22_v30  ;;  %v147_v35 = vsel %vm83_vm3, 0.01, %v115_v32  ;;  %vm85_vm7 = vcmp.eq.f32.partialorder %v21_v28, 0.0  ;;  %v2744_v49 = vld [vmem:[%s3202_s1 + $0x8] sm:$0xff]  ;;  %v2754_v54 = vld [vmem:[%s3202_s1 + $0x18] sm:$0xff] }
   0xc   :  { %v148_v37 = vsel %vm84_vm4, 0.01, %v116_v33  ;;  %vm86_vm8 = vcmp.eq.f32.partialorder %v22_v30, 0.0  ;;  %v118_v39 = vsel %vm54_vm6, 0.0, %v22_v30  ;;  %vm55_vm9 = vcmp.ne.f32.partialorder %v23_v34, %v23_v34  ;;  %v2749_v52 = vld [vmem:[%s3202_s1 + $0x28] sm:$0xff]  ;;  %v2765_v57 = vld [vmem:[%s3202_s1 + $0x38] sm:$0xff] }
   0xd   :  { %2225 = vmatpush3.msk.msra.mxu0 %vm275_vm5, %v176_v12  ;;  %vm53_vm5 = vcmp.ne.f32.partialorder %v21_v28, %v21_v28  ;;  %vm56_vm10 = vcmp.ne.f32.partialorder %v24_v36, %v24_v36  ;;  %v150_v43 = vsel %vm86_vm8, 0.01, %v118_v39  ;;  %vm87_vm11 = vcmp.eq.f32.partialorder %v23_v34, 0.0  ;;  %v29_v55 = vld [vmem:[%s3201_s0 + $0x88] sm:$0xff] }
   0xe   :  { %2227 = vmatmul.mubr.msk.f32.vlgmr.msra.gmra.mrb[0].mxu0 %vm178_vm2, %v141_v17  ;;  %v117_v38 = vsel %vm53_vm5, 0.0, %v21_v28  ;;  %v119_v44 = vsel %vm55_vm9, 0.0, %v23_v34  ;;  %vm88_vm12 = vcmp.eq.f32.partialorder %v24_v36, 0.0  ;;  %v120_v45 = vsel %vm56_vm10, 0.0, %v24_v36 }
   0xf   :  { %2229 = vmatprep.mubr.msk.f32.mxu0 %vm178_vm2, %v142_v19  ;;  %v149_v41 = vsel %vm85_vm7, 0.01, %v117_v38  ;;  %vm57_vm13 = vcmp.ne.f32.partialorder %v25_v40, %v25_v40  ;;  %vm58_vm14 = vcmp.ne.f32.partialorder %v26_v42, %v26_v42  ;;  %v151_v47 = vsel %vm87_vm11, 0.01, %v119_v44 }
  0x10   :  { %v152_v50 = vsel %vm88_vm12, 0.01, %v120_v45  ;;  %vm89_vm15 = vcmp.eq.f32.partialorder %v25_v40, 0.0  ;;  %v121_v51 = vsel %vm57_vm13, 0.0, %v25_v40  ;;  %vm90_vm0 = vcmp.eq.f32.partialorder %v26_v42, 0.0 }
  0x11   :  { %v122_v53 = vsel %vm58_vm14, 0.0, %v26_v42  ;;  %vm59_vm1 = vcmp.ne.f32.partialorder %v27_v46, %v27_v46  ;;  %vm60_vm3 = vcmp.ne.f32.partialorder %v28_v48, %v28_v48  ;;  %v2522_v56 = vpack.i.bf16 %v2744_v49, %v2653_v0 }
  0x12   :  { %2230 = vmatmul.mubr.msk.f32.gmra.mrb[2].mxu0 %vm178_vm2, %v143_v23 }
  0x13   :  { %2232 = vmatprep.mubr.msk.f32.mxu0 %vm178_vm2, %v144_v25 }
  0x16   :  { %2233 = vmatmul.mubr.msk.f32.gmra.mrb[4].mxu0 %vm178_vm2, %v145_v29 }
  0x17   :  { %2235 = vmatprep.mubr.msk.f32.mxu0 %vm178_vm2, %v146_v31 }
  0x1a   :  { %2236 = vmatmul.mubr.msk.f32.gmra.mrb[6].mxu0 %vm178_vm2, %v147_v35 }
  0x1b   :  { %2238 = vmatprep.mubr.msk.f32.mxu0 %vm178_vm2, %v148_v37 }
  0x1e   :  { %2239 = vmatmul.mubr.msk.f32.gmra.mrb[8].mxu0 %vm178_vm2, %v149_v41 }
  0x1f   :  { %2241 = vmatprep.mubr.msk.f32.mxu0 %vm178_vm2, %v150_v43 }
  0x22   :  { %2242 = vmatmul.mubr.msk.f32.gmra.mrb[10].mxu0 %vm178_vm2, %v151_v47 }
  0x23   :  { %7 = vsyncpa [#allocation3], 0  ;;  %2244 = vmatprep.mubr.msk.f32.mxu0 %vm178_vm2, %v152_v50  ;;  %v153_v58 = vsel %vm89_vm15, 0.01, %v121_v51  ;;  %v30_v59 = vld [vmem:[%s3201_s0 + $0x90] sm:$0xff]  ;;  %v2532_v60 = vpack.i.bf16 %v2749_v52, %v2663_v2  ;;  %vm91_vm4 = vcmp.eq.f32.partialorder %v27_v46, 0.0  ;;  %v2527_v63 = vpack.i.bf16 %v2754_v54, %v2658_v1 }
  0x24   :  { %v154_v61 = vsel %vm90_vm0, 0.01, %v122_v53  ;;  %v123_v62 = vsel %vm59_vm1, 0.0, %v27_v46  ;;  %s2631_s9 = smov 32   ;;  %vm92_vm5 = vcmp.eq.f32.partialorder %v28_v48, 0.0  ;;  %v124_v0 = vsel %vm60_vm3, 0.0, %v28_v48 }
  0x25   :  { %2523 = vrot.lane.b32.xlu0 %v2522_v56, %s2631_s9  ;;  %vm61_vm6 = vcmp.ne.f32.partialorder %v29_v55, %v29_v55  ;;  %2533 = vrot.lane.b32.xlu1 %v2532_v60, %s2631_s9  ;;  %v2537_v3 = vpack.i.bf16 %v2765_v57, %v2670_v4  ;;  %v576_v2 = vld [vmem:[%s3202_s1 + $0x40] sm:$0xff]  ;;  %v2786_v5 = vld [vmem:[%s3202_s1 + $0x48] sm:$0xff]  ;;  %vm62_vm7 = vcmp.ne.f32.partialorder %v30_v59, %v30_v59  ;;  %v155_v7 = vsel %vm91_vm4, 0.01, %v123_v62  ;;  %s2633_s19 = smov 80  }
  0x26   :  { %2245 = vmatmul.mubr.msk.f32.gmra.mrb[12].mxu0 %vm178_vm2, %v153_v58  ;;  %v31_v1 = vld [vmem:[%s3201_s0 + $0x98] sm:$0xff]  ;;  %v578_v4 = vld [vmem:[%s3202_s1 + $0x50] sm:$0xff]  ;;  %v32_v8 = vld [vmem:[%s3201_s0 + $0xa0] sm:$0xff]  ;;  %v156_v9 = vsel %vm92_vm5, 0.01, %v124_v0  ;;  %vm93_vm8 = vcmp.eq.f32.partialorder %v29_v55, 0.0  ;;  %v2542_v11 = vpack.i.bf16 %v2786_v5, %v576_v2 }
  0x27   :  { %v2798_v6 = vld [vmem:[%s3202_s1 + $0x58] sm:$0xff]  ;;  %2247 = vmatprep.mubr.msk.f32.mxu0 %vm178_vm2, %v154_v61  ;;  %v125_v10 = vsel %vm61_vm6, 0.0, %v29_v55  ;;  %vm94_vm9 = vcmp.eq.f32.partialorder %v30_v59, 0.0  ;;  %v126_v12 = vsel %vm62_vm7, 0.0, %v30_v59  ;;  %vm63_vm10 = vcmp.ne.f32.partialorder %v31_v1, %v31_v1  ;;  %v580_v14 = vld [vmem:[%s3202_s1 + $0x60] sm:$0xff]  ;;  %v581_v15 = vld [vmem:[%s3202_s1 + $0x68] sm:$0xff] }
  0x28   :  { %v2547_v13 = vpack.i.bf16 %v2798_v6, %v578_v4  ;;  %vm64_vm11 = vcmp.ne.f32.partialorder %v32_v8, %v32_v8  ;;  %v33_v16 = vld [vmem:[%s3201_s0 + $0xa8] sm:$0xff]  ;;  %v582_v17 = vld [vmem:[%s3202_s1 + $0x70] sm:$0xff]  ;;  %v583_v18 = vld [vmem:[%s3202_s1 + $0x78] sm:$0xff]  ;;  %v157_v19 = vsel %vm93_vm8, 0.01, %v125_v10  ;;  %vm95_vm12 = vcmp.eq.f32.partialorder %v31_v1, 0.0 }
  0x29   :  { %2528 = vrot.lane.b32.xlu0 %v2527_v63, %s2631_s9  ;;  %2538 = vrot.lane.b32.xlu1 %v2537_v3, %s2631_s9  ;;  %v34_v20 = vld [vmem:[%s3201_s0 + $0xb0] sm:$0xff]  ;;  %v158_v21 = vsel %vm94_vm9, 0.01, %v126_v12  ;;  %v127_v22 = vsel %vm63_vm10, 0.0, %v31_v1  ;;  %v2552_v23 = vpack.i.bf16 %v581_v15, %v580_v14  ;;  %vm96_vm13 = vcmp.eq.f32.partialorder %v32_v8, 0.0  ;;  %v584_v26 = vld [vmem:[%s3202_s1 + $0x80] sm:$0xff] }
  0x2a   :  { %2248 = vmatmul.mubr.msk.f32.gmra.mrb[14].mxu0 %vm178_vm2, %v155_v7  ;;  %v128_v24 = vsel %vm64_vm11, 0.0, %v32_v8  ;;  %vm65_vm14 = vcmp.ne.f32.partialorder %v33_v16, %v33_v16  ;;  %v2557_v25 = vpack.i.bf16 %v583_v18, %v582_v17  ;;  %v585_v27 = vld [vmem:[%s3202_s1 + $0x88] sm:$0xff]  ;;  %vm66_vm15 = vcmp.ne.f32.partialorder %v34_v20, %v34_v20  ;;  %v35_v28 = vld [vmem:[%s3201_s0 + $0xb8] sm:$0xff]  ;;  %v586_v29 = vld [vmem:[%s3202_s1 + $0x90] sm:$0xff] }
  0x2b   :  { %2250 = vmatprep.mubr.msk.f32.mxu0 %vm178_vm2, %v156_v9  ;;  %v587_v30 = vld [vmem:[%s3202_s1 + $0x98] sm:$0xff]  ;;  %v159_v31 = vsel %vm95_vm12, 0.01, %v127_v22  ;;  %v36_v32 = vld [vmem:[%s3201_s0 + $0xc0] sm:$0xff]  ;;  %v160_v33 = vsel %vm96_vm13, 0.01, %v128_v24  ;;  %v2562_v35 = vpack.i.bf16 %v585_v27, %v584_v26  ;;  %vm67_vm3 = vcmp.ne.f32.partialorder %v35_v28, %v35_v28 }
  0x2c   :  { %vm97_vm0 = vcmp.eq.f32.partialorder %v33_v16, 0.0  ;;  %v129_v34 = vsel %vm65_vm14, 0.0, %v33_v16  ;;  %vm98_vm1 = vcmp.eq.f32.partialorder %v34_v20, 0.0  ;;  %v130_v36 = vsel %vm66_vm15, 0.0, %v34_v20  ;;  %v588_v38 = vld [vmem:[%s3202_s1 + $0xa0] sm:$0xff]  ;;  %v589_v39 = vld [vmem:[%s3202_s1 + $0xa8] sm:$0xff] }
  0x2d   :  { %2543 = vrot.lane.b32.xlu0 %v2542_v11, %s2631_s9  ;;  %2548 = vrot.lane.b32.xlu1 %v2547_v13, %s2631_s9  ;;  %v2567_v37 = vpack.i.bf16 %v587_v30, %v586_v29  ;;  %vm68_vm4 = vcmp.ne.f32.partialorder %v36_v32, %v36_v32  ;;  %v37_v40 = vld [vmem:[%s3201_s0 + $0xc8] sm:$0xff]  ;;  %v590_v41 = vld [vmem:[%s3202_s1 + $0xb0] sm:$0xff]  ;;  %v161_v43 = vsel %vm97_vm0, 0.01, %v129_v34  ;;  %v162_v45 = vsel %vm98_vm1, 0.01, %v130_v36 }
  0x2e   :  { %2251 = vmatmul.mubr.msk.f32.gmra.mrb[16].mxu0 %vm178_vm2, %v157_v19  ;;  %v591_v42 = vld [vmem:[%s3202_s1 + $0xb8] sm:$0xff]  ;;  %v38_v44 = vld [vmem:[%s3201_s0 + $0xd0] sm:$0xff]  ;;  %vm99_vm5 = vcmp.eq.f32.partialorder %v35_v28, 0.0  ;;  %v131_v46 = vsel %vm67_vm3, 0.0, %v35_v28  ;;  %v2572_v47 = vpack.i.bf16 %v589_v39, %v588_v38  ;;  %vm100_vm6 = vcmp.eq.f32.partialorder %v36_v32, 0.0  ;;  %v40_v55 = vld [vmem:[%s3201_s0 + $0xe0] sm:$0xff] }
  0x2f   :  { %2253 = vmatprep.mubr.msk.f32.mxu0 %vm178_vm2, %v158_v21  ;;  %v132_v48 = vsel %vm68_vm4, 0.0, %v36_v32  ;;  %vm69_vm7 = vcmp.ne.f32.partialorder %v37_v40, %v37_v40  ;;  %v2577_v50 = vpack.i.bf16 %v591_v42, %v590_v41  ;;  %vm70_vm8 = vcmp.ne.f32.partialorder %v38_v44, %v38_v44  ;;  %v39_v51 = vld [vmem:[%s3201_s0 + $0xd8] sm:$0xff]  ;;  %v41_v60 = vld [vmem:[%s3201_s0 + $0xe8] sm:$0xff]  ;;  %v42_v62 = vld [vmem:[%s3201_s0 + $0xf0] sm:$0xff] }
  0x30   :  { %v163_v53 = vsel %vm99_vm5, 0.01, %v131_v46  ;;  %v164_v56 = vsel %vm100_vm6, 0.01, %v132_v48  ;;  %vm101_vm9 = vcmp.eq.f32.partialorder %v37_v40, 0.0  ;;  %v133_v58 = vsel %vm69_vm7, 0.0, %v37_v40 }
  0x31   :  { %2553 = vrot.lane.b32.xlu0 %v2552_v23, %s2631_s9  ;;  %2558 = vrot.lane.b32.xlu1 %v2557_v25, %s2631_s9  ;;  %vm102_vm10 = vcmp.eq.f32.partialorder %v38_v44, 0.0  ;;  %v134_v59 = vsel %vm70_vm8, 0.0, %v38_v44  ;;  %vm71_vm11 = vcmp.ne.f32.partialorder %v39_v51, %v39_v51  ;;  %vm72_vm12 = vcmp.ne.f32.partialorder %v40_v55, %v40_v55  ;;  %v43_v2 = vld [vmem:[%s3201_s0 + $0xf8] sm:$0xff]  ;;  %s2632_s0 = smov 112  }
  0x32   :  { %2254 = vmatmul.mubr.msk.f32.gmra.mrb[18].mxu0 %vm178_vm2, %v159_v31  ;;  %v165_v61 = vsel %vm101_vm9, 0.01, %v133_v58  ;;  %v166_v63 = vsel %vm102_vm10, 0.01, %v134_v59  ;;  %vm103_vm13 = vcmp.eq.f32.partialorder %v39_v51, 0.0  ;;  %v135_v0 = vsel %vm71_vm11, 0.0, %v39_v51 }
  0x33   :  { %2256 = vmatprep.mubr.msk.f32.mxu0 %vm178_vm2, %v160_v33  ;;  %vm104_vm14 = vcmp.eq.f32.partialorder %v40_v55, 0.0  ;;  %v136_v3 = vsel %vm72_vm12, 0.0, %v40_v55  ;;  %vm73_vm15 = vcmp.ne.f32.partialorder %v41_v60, %v41_v60  ;;  %vm74_vm0 = vcmp.ne.f32.partialorder %v42_v62, %v42_v62 }
  0x34   :  { %v167_v1 = vsel %vm103_vm13, 0.01, %v135_v0  ;;  %v168_v4 = vsel %vm104_vm14, 0.01, %v136_v3  ;;  %vm105_vm1 = vcmp.eq.f32.partialorder %v41_v60, 0.0  ;;  %v137_v7 = vsel %vm73_vm15, 0.0, %v41_v60 }
  0x35   :  { %2563 = vrot.lane.b32.xlu0 %v2562_v35, %s2631_s9  ;;  %2568 = vrot.lane.b32.xlu1 %v2567_v37, %s2631_s9  ;;  %vm106_vm3 = vcmp.eq.f32.partialorder %v42_v62, 0.0  ;;  %v138_v8 = vsel %vm74_vm0, 0.0, %v42_v62  ;;  %vm75_vm4 = vcmp.ne.f32.partialorder %v43_v2, %v43_v2  ;;  %v169_v9 = vsel %vm105_vm1, 0.01, %v137_v7 }
  0x36   :  { %2257 = vmatmul.mubr.msk.f32.gmra.mrb[20].mxu0 %vm178_vm2, %v161_v43  ;;  %v170_v10 = vsel %vm106_vm3, 0.01, %v138_v8  ;;  %vm107_vm5 = vcmp.eq.f32.partialorder %v43_v2, 0.0  ;;  %v139_v11 = vsel %vm75_vm4, 0.0, %v43_v2  ;;  %v2908_v13 = vpack.i.bf16 %v2754_v54, %v2744_v49  ;;  %v2944_v8 = vld [vmem:[%s3202_s1 + $0x44] ss:$0 sm:$0xff] }
  0x37   :  { %2259 = vmatprep.mubr.msk.f32.mxu0 %vm178_vm2, %v162_v45  ;;  %v171_v12 = vsel %vm107_vm5, 0.01, %v139_v11  ;;  %vm666_vm6 = vcmask 261120   ;;  %v2920_v43 = vpack.i.bf16 %v2765_v57, %v2749_v52  ;;  %v593_v52 = vld [vmem:[%s3202_s1 + $0xc8] ss:$0 sm:$0xff]  ;;  %vm1120_vm7 = vcmask 392192  }
  0x39   :  { %2573 = vrot.lane.b32.xlu0 %v2572_v47, %s2631_s9  ;;  %2578 = vrot.lane.b32.xlu1 %v2577_v50, %s2631_s9  ;;  %v592_v50 = vld [vmem:[%s3202_s1 + $0xc0] ss:$0 sm:$0xff] }
  0x3a   :  { %2260 = vmatmul.mubr.msk.f32.gmra.mrb[22].mxu0 %vm178_vm2, %v163_v53 }
  0x3b   :  { %2262 = vmatprep.mubr.msk.f32.mxu0 %vm178_vm2, %v164_v56  ;;  %v2592_v56 = vpack.i.bf16 %v2798_v6, %v2786_v5 }
  0x3d   :  { %2583 = vrot.lane.b32.xlu0 %v2908_v13, %s2632_s0  ;;  %2588 = vrot.lane.b32.xlu1 %v2920_v43, %s2632_s0 }
  0x3e   :  { %2263 = vmatmul.mubr.msk.f32.gmra.mrb[24].mxu0 %vm178_vm2, %v165_v61 }
  0x3f   :  { %2265 = vmatprep.mubr.msk.f32.mxu0 %vm178_vm2, %v166_v63 }
  0x41   :  { %693 = vrot.lane.b32.xlu0 %v592_v50, %s2631_s9  ;;  %695 = vrot.lane.b32.xlu1 %v593_v52, %s2631_s9 }
  0x42   :  { %2266 = vmatmul.mubr.msk.f32.gmra.mrb[26].mxu0 %vm178_vm2, %v167_v1 }
  0x43   :  { %2268 = vmatprep.mubr.msk.f32.mxu0 %vm178_vm2, %v168_v4 }
  0x45   :  { %2593 = vrot.lane.b32.xlu0 %v2592_v56, %s2632_s0  ;;  %2598 = vrot.lane.b32.xlu1 %v2908_v13, %s2633_s19 }
  0x46   :  { %2269 = vmatmul.mubr.msk.f32.gmra.mrb[28].mxu0 %vm178_vm2, %v169_v9 }
  0x47   :  { %2271 = vmatprep.mubr.msk.f32.mxu0 %vm178_vm2, %v170_v10 }
  0x49   :  { %2603 = vrot.lane.b32.xlu1 %v2920_v43, %s2633_s19 }
  0x4a   :  { %2272 = vmatmul.mubr.msk.f32.gmra.mrb[30].mxu0 %vm178_vm2, %v171_v12  ;;  %vm699_vm2 = vcmask 785408  }
  0x97   :  { %v2524_v14 = vpop.permute.xlu0 %2523  ;;  %v2534_v17 = vpop.permute.xlu1 %2533 }
  0x98   :  { %v2526_v15 = vunpack.i.h.bf16 %v2524_v14  ;;  %v2525_v16 = vunpack.i.l.bf16 %v2524_v14  ;;  %v2536_v18 = vunpack.i.h.bf16 %v2534_v17  ;;  %v2535_v19 = vunpack.i.l.bf16 %v2534_v17 }
  0x9a   :  { %v667_v24 = vsel %vm666_vm6, %v2525_v16, %v2526_v15  ;;  %v669_v54 = vsel %vm666_vm6, %v2535_v19, %v2536_v18 }
  0x9b   :  { %v2529_v20 = vpop.permute.xlu0 %2528  ;;  %v2539_v23 = vpop.permute.xlu1 %2538 }
  0x9c   :  { %v2531_v21 = vunpack.i.h.bf16 %v2529_v20  ;;  %v2530_v22 = vunpack.i.l.bf16 %v2529_v20  ;;  %v2541_v25 = vunpack.i.h.bf16 %v2539_v23  ;;  %v2540_v49 = vunpack.i.l.bf16 %v2539_v23 }
  0x9e   :  { %v668_v26 = vsel %vm666_vm6, %v2530_v22, %v2531_v21  ;;  %v670_v28 = vsel %vm666_vm6, %v2540_v49, %v2541_v25 }
  0x9f   :  { %v2470_v27 = vpack.c.bf16 %v668_v26, %v667_v24  ;;  %v2544_v29 = vpop.permute.xlu0 %2543  ;;  %v2474_v30 = vpack.c.bf16 %v670_v28, %v669_v54  ;;  %v2549_v31 = vpop.permute.xlu1 %2548 }
  0xa0   :  { %v2546_v32 = vunpack.i.h.bf16 %v2544_v29  ;;  %v2545_v33 = vunpack.i.l.bf16 %v2544_v29  ;;  %v2551_v34 = vunpack.i.h.bf16 %v2549_v31  ;;  %v2550_v35 = vunpack.i.l.bf16 %v2549_v31 }
  0xa1   :  { %2471 = vmatprep.subr.bf16.mxu1 %v2470_v27 }
  0xa2   :  { %2473 = vmatpush3.bf16.msra.mxu1 %v2470_v27  ;;  %v671_v36 = vsel %vm666_vm6, %v2545_v33, %v2546_v32  ;;  %v672_v38 = vsel %vm666_vm6, %v2550_v35, %v2551_v34 }
  0xa3   :  { %2475 = vmatprep.subr.bf16.mxu1 %v2474_v30  ;;  %v2554_v37 = vpop.permute.xlu0 %2553  ;;  %v2559_v39 = vpop.permute.xlu1 %2558  ;;  %v2478_v42 = vpack.c.bf16 %v672_v38, %v671_v36 }
  0xa4   :  { %v2556_v40 = vunpack.i.h.bf16 %v2554_v37  ;;  %v2555_v41 = vunpack.i.l.bf16 %v2554_v37  ;;  %v2561_v44 = vunpack.i.h.bf16 %v2559_v39  ;;  %v2560_v45 = vunpack.i.l.bf16 %v2559_v39 }
  0xa6   :  { %2477 = vmatpush3.bf16.msra.mxu1 %v2474_v30  ;;  %v673_v46 = vsel %vm666_vm6, %v2555_v41, %v2556_v40  ;;  %v674_v48 = vsel %vm666_vm6, %v2560_v45, %v2561_v44 }
  0xa7   :  { %2479 = vmatprep.subr.bf16.mxu1 %v2478_v42  ;;  %v2564_v47 = vpop.permute.xlu0 %2563  ;;  %v2569_v57 = vpop.permute.xlu1 %2568  ;;  %v2482_v55 = vpack.c.bf16 %v674_v48, %v673_v46 }
  0xa8   :  { %v2566_v51 = vunpack.i.h.bf16 %v2564_v47  ;;  %v2565_v53 = vunpack.i.l.bf16 %v2564_v47  ;;  %v2571_v58 = vunpack.i.h.bf16 %v2569_v57  ;;  %v2570_v59 = vunpack.i.l.bf16 %v2569_v57 }
  0xaa   :  { %2481 = vmatpush3.bf16.msra.mxu1 %v2478_v42  ;;  %v675_v60 = vsel %vm666_vm6, %v2565_v53, %v2566_v51  ;;  %v676_v62 = vsel %vm666_vm6, %v2570_v59, %v2571_v58 }
  0xab   :  { %2483 = vmatprep.subr.bf16.mxu1 %v2482_v55  ;;  %v2574_v61 = vpop.permute.xlu0 %2573  ;;  %v2579_v63 = vpop.permute.xlu1 %2578  ;;  %v2486_v2 = vpack.c.bf16 %v676_v62, %v675_v60 }
  0xac   :  { %v2576_v0 = vunpack.i.h.bf16 %v2574_v61  ;;  %v2575_v3 = vunpack.i.l.bf16 %v2574_v61  ;;  %v2581_v1 = vunpack.i.h.bf16 %v2579_v63  ;;  %v2580_v4 = vunpack.i.l.bf16 %v2579_v63 }
  0xae   :  { %2485 = vmatpush3.bf16.msra.mxu1 %v2482_v55  ;;  %v677_v5 = vsel %vm666_vm6, %v2575_v3, %v2576_v0  ;;  %v678_v6 = vsel %vm666_vm6, %v2580_v4, %v2581_v1 }
  0xaf   :  { %2487 = vmatprep.subr.bf16.mxu1 %v2486_v2  ;;  %v2490_v7 = vpack.c.bf16 %v678_v6, %v677_v5 }
  0xb2   :  { %2489 = vmatpush3.bf16.msra.mxu1 %v2486_v2 }
  0xb3   :  { %2491 = vmatprep.subr.bf16.mxu1 %v2490_v7 }
  0xb6   :  { %2493 = vmatpush3.bf16.msra.mxu1 %v2490_v7 }
  0xe1   :  { %v2228_v9 = vpop.f32.mrb[0].mxu0 }
  0xe2   :  { %v351_v10 = vadd.f32 %v2228_v9, %v2944_v8  ;;  %v345_v11 = vpop.f32.mrb[1].mxu0 }
  0xe3   :  { %v346_v12 = vadd.f32 %v345_v11, %v2944_v8 }
  0xe4   :  { %v505_v14 = vmul.f32 0.01, %v351_v10 }
  0xe5   :  { %v504_v15 = vmul.f32 0.01, %v346_v12  ;;  %v2231_v16 = vpop.f32.mrb[2].mxu0 }
  0xe6   :  { %v361_v17 = vadd.f32 %v2231_v16, %v2944_v8  ;;  %v355_v18 = vpop.f32.mrb[3].mxu0  ;;  %v537_v21 = vmax.f32 %v351_v10, %v505_v14  ;;  %v2584_v16 = vpop.permute.xlu0 %2583 }
  0xe7   :  { %v356_v19 = vadd.f32 %v355_v18, %v2944_v8  ;;  %v536_v20 = vmax.f32 %v346_v12, %v504_v15 }
  0xe8   :  { %v507_v22 = vmul.f32 0.01, %v361_v17 }
  0xe9   :  { %v506_v23 = vmul.f32 0.01, %v356_v19  ;;  %v2234_v24 = vpop.f32.mrb[4].mxu0  ;;  %2298 = vmatprep.mubr.msk.f32.mxu1 %vm699_vm2, %v536_v20  ;;  %v2585_v20 = vunpack.i.l.bf16 %v2584_v16 }
  0xea   :  { %v371_v25 = vadd.f32 %v2234_v24, %v2944_v8  ;;  %v365_v49 = vpop.f32.mrb[5].mxu0  ;;  %2299 = vmatmul.mubr.msk.f32.vlgmr.msra.gmra.mrb[0].mxu1 %vm699_vm2, %v537_v21  ;;  %v539_v27 = vmax.f32 %v361_v17, %v507_v22 }
  0xeb   :  { %v538_v54 = vmax.f32 %v356_v19, %v506_v23  ;;  %v366_v26 = vadd.f32 %v365_v49, %v2944_v8  ;;  %v2586_v19 = vunpack.i.h.bf16 %v2584_v16 }
  0xec   :  { %v509_v28 = vmul.f32 0.01, %v371_v25 }
  0xed   :  { %v508_v29 = vmul.f32 0.01, %v366_v26  ;;  %v2237_v30 = vpop.f32.mrb[6].mxu0  ;;  %2301 = vmatprep.mubr.msk.f32.mxu1 %vm699_vm2, %v538_v54 }
  0xee   :  { %v381_v31 = vadd.f32 %v2237_v30, %v2944_v8  ;;  %v375_v32 = vpop.f32.mrb[7].mxu0  ;;  %2302 = vmatmul.mubr.msk.f32.gmra.mrb[2].mxu1 %vm699_vm2, %v539_v27  ;;  %v541_v35 = vmax.f32 %v371_v25, %v509_v28  ;;  %v2494_v25 = vpack.c.bf16 %v2586_v19, %v2585_v20 }
  0xef   :  { %v540_v33 = vmax.f32 %v366_v26, %v508_v29  ;;  %v376_v34 = vadd.f32 %v375_v32, %v2944_v8 }
  0xf0   :  { %v511_v36 = vmul.f32 0.01, %v381_v31  ;;  %2495 = vmatprep.subr.bf16.mxu0 %v2494_v25 }
  0xf1   :  { %v510_v37 = vmul.f32 0.01, %v376_v34  ;;  %v2240_v38 = vpop.f32.mrb[8].mxu0  ;;  %2304 = vmatprep.mubr.msk.f32.mxu1 %vm699_vm2, %v540_v33  ;;  %2497 = vmatpush3.bf16.msra.mxu0 %v2494_v25 }
  0xf2   :  { %v391_v39 = vadd.f32 %v2240_v38, %v2944_v8  ;;  %v385_v40 = vpop.f32.mrb[9].mxu0  ;;  %2305 = vmatmul.mubr.msk.f32.gmra.mrb[4].mxu1 %vm699_vm2, %v541_v35  ;;  %v543_v44 = vmax.f32 %v381_v31, %v511_v36 }
  0xf3   :  { %v542_v41 = vmax.f32 %v376_v34, %v510_v37  ;;  %v386_v42 = vadd.f32 %v385_v40, %v2944_v8 }
  0xf4   :  { %v513_v45 = vmul.f32 0.01, %v391_v39 }
  0xf5   :  { %v512_v46 = vmul.f32 0.01, %v386_v42  ;;  %v2243_v47 = vpop.f32.mrb[10].mxu0  ;;  %2307 = vmatprep.mubr.msk.f32.mxu1 %vm699_vm2, %v542_v41 }
  0xf6   :  { %v401_v48 = vadd.f32 %v2243_v47, %v2944_v8  ;;  %v395_v50 = vpop.f32.mrb[11].mxu0  ;;  %2308 = vmatmul.mubr.msk.f32.gmra.mrb[6].mxu1 %vm699_vm2, %v543_v44  ;;  %v545_v51 = vmax.f32 %v391_v39, %v513_v45 }
  0xf7   :  { %v544_v52 = vmax.f32 %v386_v42, %v512_v46  ;;  %v396_v57 = vadd.f32 %v395_v50, %v2944_v8 }
  0xf8   :  { %v515_v53 = vmul.f32 0.01, %v401_v48 }
  0xf9   :  { %v514_v55 = vmul.f32 0.01, %v396_v57  ;;  %v2246_v56 = vpop.f32.mrb[12].mxu0  ;;  %2310 = vmatprep.mubr.msk.f32.mxu1 %vm699_vm2, %v544_v52 }
  0xfa   :  { %v411_v58 = vadd.f32 %v2246_v56, %v2944_v8  ;;  %v405_v59 = vpop.f32.mrb[13].mxu0  ;;  %2311 = vmatmul.mubr.msk.f32.gmra.mrb[8].mxu1 %vm699_vm2, %v545_v51  ;;  %v547_v62 = vmax.f32 %v401_v48, %v515_v53 }
  0xfb   :  { %v546_v60 = vmax.f32 %v396_v57, %v514_v55  ;;  %v406_v61 = vadd.f32 %v405_v59, %v2944_v8 }
  0xfc   :  { %v517_v63 = vmul.f32 0.01, %v411_v58 }
  0xfd   :  { %v516_v0 = vmul.f32 0.01, %v406_v61  ;;  %v2249_v3 = vpop.f32.mrb[14].mxu0  ;;  %2313 = vmatprep.mubr.msk.f32.mxu1 %vm699_vm2, %v546_v60 }
  0xfe   :  { %v421_v2 = vadd.f32 %v2249_v3, %v2944_v8  ;;  %v415_v1 = vpop.f32.mrb[15].mxu0  ;;  %2314 = vmatmul.mubr.msk.f32.gmra.mrb[10].mxu1 %vm699_vm2, %v547_v62  ;;  %v549_v6 = vmax.f32 %v411_v58, %v517_v63  ;;  %v2589_v62 = vpop.permute.xlu1 %2588 }
  0xff   :  { %v548_v4 = vmax.f32 %v406_v61, %v516_v0  ;;  %v416_v5 = vadd.f32 %v415_v1, %v2944_v8  ;;  %v2591_v0 = vunpack.i.h.bf16 %v2589_v62  ;;  %v2590_v3 = vunpack.i.l.bf16 %v2589_v62 }
 0x100   :  { %v519_v7 = vmul.f32 0.01, %v421_v2 }
 0x101   :  { %v518_v9 = vmul.f32 0.01, %v416_v5  ;;  %v2252_v10 = vpop.f32.mrb[16].mxu0  ;;  %2316 = vmatprep.mubr.msk.f32.mxu1 %vm699_vm2, %v548_v4  ;;  %v694_v4 = vpop.permute.xlu0 %693 }
 0x102   :  { %v431_v11 = vadd.f32 %v2252_v10, %v2944_v8  ;;  %v425_v12 = vpop.f32.mrb[17].mxu0  ;;  %2317 = vmatmul.mubr.msk.f32.gmra.mrb[12].mxu1 %vm699_vm2, %v549_v6  ;;  %v551_v17 = vmax.f32 %v421_v2, %v519_v7 }
 0x103   :  { %v550_v14 = vmax.f32 %v416_v5, %v518_v9  ;;  %v426_v15 = vadd.f32 %v425_v12, %v2944_v8  ;;  %v2498_v9 = vpack.c.bf16 %v2591_v0, %v2590_v3 }
 0x104   :  { %v521_v18 = vmul.f32 0.01, %v431_v11 }
 0x105   :  { %v520_v21 = vmul.f32 0.01, %v426_v15  ;;  %v2255_v22 = vpop.f32.mrb[18].mxu0  ;;  %2319 = vmatprep.mubr.msk.f32.mxu1 %vm699_vm2, %v550_v14  ;;  %2499 = vmatprep.subr.bf16.mxu0 %v2498_v9  ;;  %v2594_v16 = vpop.permute.xlu0 %2593 }
 0x106   :  { %v441_v23 = vadd.f32 %v2255_v22, %v2944_v8  ;;  %v435_v24 = vpop.f32.mrb[19].mxu0  ;;  %2320 = vmatmul.mubr.msk.f32.gmra.mrb[14].mxu1 %vm699_vm2, %v551_v17  ;;  %v553_v26 = vmax.f32 %v431_v11, %v521_v18  ;;  %2501 = vmatpush3.bf16.msra.mxu0 %v2498_v9  ;;  %v2596_v20 = vunpack.i.h.bf16 %v2594_v16 }
 0x107   :  { %v552_v49 = vmax.f32 %v426_v15, %v520_v21  ;;  %v436_v54 = vadd.f32 %v435_v24, %v2944_v8  ;;  %v2595_v21 = vunpack.i.l.bf16 %v2594_v16 }
 0x108   :  { %v523_v27 = vmul.f32 0.01, %v441_v23 }
 0x109   :  { %v522_v28 = vmul.f32 0.01, %v436_v54  ;;  %v2258_v29 = vpop.f32.mrb[20].mxu0  ;;  %2322 = vmatprep.mubr.msk.f32.mxu1 %vm699_vm2, %v552_v49  ;;  %v2502_v25 = vpack.c.bf16 %v2596_v20, %v2595_v21 }
 0x10a   :  { %v555_v30 = vmax.f32 %v441_v23, %v523_v27  ;;  %v451_v31 = vadd.f32 %v2258_v29, %v2944_v8  ;;  %v445_v32 = vpop.f32.mrb[21].mxu0  ;;  %2323 = vmatmul.mubr.msk.f32.gmra.mrb[16].mxu1 %vm699_vm2, %v553_v26  ;;  %v696_v27 = vpop.permute.xlu1 %695 }
 0x10b   :  { %v554_v33 = vmax.f32 %v436_v54, %v522_v28  ;;  %v446_v34 = vadd.f32 %v445_v32, %v2944_v8  ;;  %2503 = vmatprep.subr.bf16.mxu0 %v2502_v25  ;;  %v3019_v28 = vsel %vm666_vm6, %v694_v4, %v696_v27 }
 0x10c   :  { %v525_v35 = vmul.f32 0.01, %v451_v31  ;;  %2505 = vmatpush3.bf16.msra.mxu0 %v2502_v25 }
 0x10d   :  { %v524_v36 = vmul.f32 0.01, %v446_v34  ;;  %v2261_v37 = vpop.f32.mrb[22].mxu0  ;;  %2325 = vmatprep.mubr.msk.f32.mxu1 %vm699_vm2, %v554_v33 }
 0x10e   :  { %v557_v38 = vmax.f32 %v451_v31, %v525_v35  ;;  %v461_v39 = vadd.f32 %v2261_v37, %v2944_v8  ;;  %v455_v40 = vpop.f32.mrb[23].mxu0  ;;  %2326 = vmatmul.mubr.msk.f32.gmra.mrb[18].mxu1 %vm699_vm2, %v555_v30 }
 0x10f   :  { %v556_v41 = vmax.f32 %v446_v34, %v524_v36  ;;  %v456_v42 = vadd.f32 %v455_v40, %v2944_v8 }
 0x110   :  { %v527_v44 = vmul.f32 0.01, %v461_v39 }
 0x111   :  { %v526_v45 = vmul.f32 0.01, %v456_v42  ;;  %v2264_v46 = vpop.f32.mrb[24].mxu0  ;;  %2328 = vmatprep.mubr.msk.f32.mxu1 %vm699_vm2, %v556_v41 }
 0x112   :  { %v559_v47 = vmax.f32 %v461_v39, %v527_v44  ;;  %v471_v48 = vadd.f32 %v2264_v46, %v2944_v8  ;;  %v465_v50 = vpop.f32.mrb[25].mxu0  ;;  %2329 = vmatmul.mubr.msk.f32.gmra.mrb[20].mxu1 %vm699_vm2, %v557_v38 }
 0x113   :  { %v558_v52 = vmax.f32 %v456_v42, %v526_v45  ;;  %v466_v57 = vadd.f32 %v465_v50, %v2944_v8 }
 0x114   :  { %v529_v51 = vmul.f32 0.01, %v471_v48 }
 0x115   :  { %v528_v53 = vmul.f32 0.01, %v466_v57  ;;  %v2267_v55 = vpop.f32.mrb[26].mxu0  ;;  %2331 = vmatprep.mubr.msk.f32.mxu1 %vm699_vm2, %v558_v52 }
 0x116   :  { %v561_v56 = vmax.f32 %v471_v48, %v529_v51  ;;  %v481_v58 = vadd.f32 %v2267_v55, %v2944_v8  ;;  %v475_v59 = vpop.f32.mrb[27].mxu0  ;;  %2332 = vmatmul.mubr.msk.f32.gmra.mrb[22].mxu1 %vm699_vm2, %v559_v47 }
 0x117   :  { %v560_v60 = vmax.f32 %v466_v57, %v528_v53  ;;  %v476_v61 = vadd.f32 %v475_v59, %v2944_v8 }
 0x118   :  { %v531_v63 = vmul.f32 0.01, %v481_v58 }
 0x119   :  { %v530_v2 = vmul.f32 0.01, %v476_v61  ;;  %v2270_v1 = vpop.f32.mrb[28].mxu0  ;;  %2334 = vmatprep.mubr.msk.f32.mxu1 %vm699_vm2, %v560_v60 }
 0x11a   :  { %v563_v5 = vmax.f32 %v481_v58, %v531_v63  ;;  %v491_v6 = vadd.f32 %v2270_v1, %v2944_v8  ;;  %v485_v7 = vpop.f32.mrb[29].mxu0  ;;  %2335 = vmatmul.mubr.msk.f32.gmra.mrb[24].mxu1 %vm699_vm2, %v561_v56 }
 0x11b   :  { %v562_v10 = vmax.f32 %v476_v61, %v530_v2  ;;  %v486_v11 = vadd.f32 %v485_v7, %v2944_v8 }
 0x11c   :  { %v533_v12 = vmul.f32 0.01, %v491_v6 }
 0x11d   :  { %v532_v14 = vmul.f32 0.01, %v486_v11  ;;  %v2273_v15 = vpop.f32.mrb[30].mxu0  ;;  %2337 = vmatprep.mubr.msk.f32.mxu1 %vm699_vm2, %v562_v10 }
 0x11e   :  { %v565_v17 = vmax.f32 %v491_v6, %v533_v12  ;;  %v501_v18 = vadd.f32 %v2273_v15, %v2944_v8  ;;  %v495_v19 = vpop.f32.mrb[31].mxu0  ;;  %2338 = vmatmul.mubr.msk.f32.gmra.mrb[26].mxu1 %vm699_vm2, %v563_v5 }
 0x11f   :  { %v564_v22 = vmax.f32 %v486_v11, %v532_v14  ;;  %v496_v23 = vadd.f32 %v495_v19, %v2944_v8  ;;  %v1091_v8 = vld [vmem:[%s3202_s1 + $0x68] ss:$0 sm:$0xff] }
 0x120   :  { %v535_v24 = vmul.f32 0.01, %v501_v18  ;;  %1117 = vrot.lane.b32.xlu0 %v1091_v8, %s2632_s0 }
 0x121   :  { %v534_v49 = vmul.f32 0.01, %v496_v23  ;;  %2340 = vmatprep.mubr.msk.f32.mxu1 %vm699_vm2, %v564_v22 }
 0x122   :  { %v567_v54 = vmax.f32 %v501_v18, %v535_v24  ;;  %2341 = vmatmul.mubr.msk.f32.gmra.mrb[28].mxu1 %vm699_vm2, %v565_v17 }
 0x123   :  { %v566_v26 = vmax.f32 %v496_v23, %v534_v49 }
 0x125   :  { %2343 = vmatprep.mubr.msk.f32.mxu1 %vm699_vm2, %v566_v26 }
 0x126   :  { %2344 = vmatmul.mubr.msk.f32.gmra.mrb[30].mxu1 %vm699_vm2, %v567_v54 }
 0x1bd   :  { %v2300_v29 = vpop.f32.mrb[0].mxu1 }
 0x1be   :  { %v868_v30 = vadd.f32 %v2300_v29, %v3019_v28  ;;  %v862_v31 = vpop.f32.mrb[1].mxu1 }
 0x1bf   :  { %v863_v32 = vadd.f32 %v862_v31, %v3019_v28 }
 0x1c0   :  { %v1022_v13 = vmul.f32 0.01, %v868_v30 }
 0x1c1   :  { %v1021_v33 = vmul.f32 0.01, %v863_v32  ;;  %v2303_v34 = vpop.f32.mrb[2].mxu1 }
 0x1c2   :  { %v878_v43 = vadd.f32 %v2303_v34, %v3019_v28  ;;  %v872_v35 = vpop.f32.mrb[3].mxu1  ;;  %v1054_v38 = vmax.f32 %v868_v30, %v1022_v13 }
 0x1c3   :  { %v1053_v36 = vmax.f32 %v863_v32, %v1021_v33  ;;  %v873_v37 = vadd.f32 %v872_v35, %v3019_v28 }
 0x1c4   :  { %v1024_v39 = vmul.f32 0.01, %v878_v43 }
 0x1c5   :  { %v1023_v40 = vmul.f32 0.01, %v873_v37  ;;  %v2306_v41 = vpop.f32.mrb[4].mxu1  ;;  %2358 = vmatprep.mubr.msk.f32.mxu0 %vm1120_vm7, %v1053_v36 }
 0x1c6   :  { %v888_v42 = vadd.f32 %v2306_v41, %v3019_v28  ;;  %v882_v44 = vpop.f32.mrb[5].mxu1  ;;  %2359 = vmatmul.mubr.msk.f32.vlgmr.msra.gmra.mrb[32].mxu0 %vm1120_vm7, %v1054_v38  ;;  %v1056_v47 = vmax.f32 %v878_v43, %v1024_v39 }
 0x1c7   :  { %v1055_v45 = vmax.f32 %v873_v37, %v1023_v40  ;;  %v883_v46 = vadd.f32 %v882_v44, %v3019_v28  ;;  %v2599_v37 = vpop.permute.xlu1 %2598 }
 0x1c8   :  { %v1026_v48 = vmul.f32 0.01, %v888_v42  ;;  %v2601_v40 = vunpack.i.h.bf16 %v2599_v37  ;;  %v2600_v41 = vunpack.i.l.bf16 %v2599_v37  ;;  %v1510_v37 = vld [vmem:[%s3202_s1 + $0x48] ss:$0 sm:$0xff]  ;;  %s2634_s1 = smov [#allocation2]  }
 0x1c9   :  { %v1025_v50 = vmul.f32 0.01, %v883_v46  ;;  %v2309_v52 = vpop.f32.mrb[6].mxu1  ;;  %2361 = vmatprep.mubr.msk.f32.mxu0 %vm1120_vm7, %v1055_v45  ;;  %1528 = vrot.lane.b32.xlu0 %v1510_v37, %s2633_s19  ;;  %s1924_s24 = sshll.u32 %s2634_s1, 4  ;;  %s1925_s24 = int_to_ptr.vmem [resolvable:$true] %s1924_s24 }
 0x1ca   :  { %v898_v57 = vadd.f32 %v2309_v52, %v3019_v28  ;;  %v892_v51 = vpop.f32.mrb[7].mxu1  ;;  %2362 = vmatmul.mubr.msk.f32.gmra.mrb[34].mxu0 %vm1120_vm7, %v1056_v47  ;;  %v1058_v56 = vmax.f32 %v888_v42, %v1026_v48  ;;  %v2506_v47 = vpack.c.bf16 %v2601_v40, %v2600_v41  ;;  %s2607_s25 = scalar_lea.vmem %s1925_s24, 256  ;;  %p2612_p1 = scmp.lt.s32.totalorder %s1925_s24, %s1925_s24 }
 0x1cb   :  { %v1057_v53 = vmax.f32 %v883_v46, %v1025_v50  ;;  %v893_v55 = vadd.f32 %v892_v51, %v3019_v28  ;;  %v2604_v52 = vpop.permute.xlu1 %2603  ;;  %p2608_p0 = scmp.ne.s32.totalorder %s1925_s24, %s2607_s25  ;;  %p2613_p2 = scmp.lt.s32.totalorder %s2607_s25, %s2607_s25 }
 0x1cc   :  { %v1028_v58 = vmul.f32 0.01, %v898_v57  ;;  %2507 = vmatprep.subr.bf16.mxu0 %v2506_v47  ;;  %2514 = vmatprep.subr.bf16.mxu1 %v2506_v47 }
 0x1cd   :  { %v1027_v59 = vmul.f32 0.01, %v893_v55  ;;  %v2312_v60 = vpop.f32.mrb[8].mxu1  ;;  %2364 = vmatprep.mubr.msk.f32.mxu0 %vm1120_vm7, %v1057_v53  ;;  %v2606_v53 = vunpack.i.h.bf16 %v2604_v52  ;;  %2509 = vmatpush3.bf16.msra.mxu0 %v2506_v47  ;;  %p2614_p3 = por %p2613_p2, %p2612_p1 }
 0x1ce   :  { %v908_v61 = vadd.f32 %v2312_v60, %v3019_v28  ;;  %v902_v62 = vpop.f32.mrb[9].mxu1  ;;  %2365 = vmatmul.mubr.msk.f32.gmra.mrb[36].mxu0 %vm1120_vm7, %v1058_v56  ;;  %v1060_v3 = vmax.f32 %v898_v57, %v1028_v58  ;;  %2516 = vmatpush3.bf16.msra.mxu1 %v2506_v47 }
 0x1cf   :  { %v1059_v63 = vmax.f32 %v893_v55, %v1027_v59  ;;  %v903_v0 = vadd.f32 %v902_v62, %v3019_v28  ;;  %v2605_v55 = vunpack.i.l.bf16 %v2604_v52  ;;  %p2615_p4 = pnand %p2614_p3, %p2608_p0 }
 0x1d0   :  { %v1030_v2 = vmul.f32 0.01, %v908_v61 }
 0x1d1   :  { %v1029_v1 = vmul.f32 0.01, %v903_v0  ;;  %v2315_v4 = vpop.f32.mrb[10].mxu1  ;;  %2367 = vmatprep.mubr.msk.f32.mxu0 %vm1120_vm7, %v1059_v63 }
 0x1d2   :  { %v918_v5 = vadd.f32 %v2315_v4, %v3019_v28  ;;  %v912_v6 = vpop.f32.mrb[11].mxu1  ;;  %2368 = vmatmul.mubr.msk.f32.gmra.mrb[38].mxu0 %vm1120_vm7, %v1060_v3  ;;  %v1062_v10 = vmax.f32 %v908_v61, %v1030_v2  ;;  %v2510_v61 = vpack.c.bf16 %v2606_v53, %v2605_v55 }
 0x1d3   :  { %v1061_v7 = vmax.f32 %v903_v0, %v1029_v1  ;;  %v913_v9 = vadd.f32 %v912_v6, %v3019_v28 }
 0x1d4   :  { %v1032_v11 = vmul.f32 0.01, %v918_v5  ;;  %2511 = vmatprep.subr.bf16.mxu0 %v2510_v61  ;;  %2515 = vmatprep.subr.bf16.mxu1 %v2510_v61 }
 0x1d5   :  { %v1031_v12 = vmul.f32 0.01, %v913_v9  ;;  %v2318_v14 = vpop.f32.mrb[12].mxu1  ;;  %2370 = vmatprep.mubr.msk.f32.mxu0 %vm1120_vm7, %v1061_v7  ;;  %2513 = vmatpush3.bf16.msra.mxu0 %v2510_v61 }
 0x1d6   :  { %v928_v15 = vadd.f32 %v2318_v14, %v3019_v28  ;;  %v922_v16 = vpop.f32.mrb[13].mxu1  ;;  %2371 = vmatmul.mubr.msk.f32.gmra.mrb[40].mxu0 %vm1120_vm7, %v1062_v10  ;;  %v1064_v19 = vmax.f32 %v918_v5, %v1032_v11  ;;  %2517 = vmatpush3.bf16.msra.mxu1 %v2510_v61 }
 0x1d7   :  { %v1063_v17 = vmax.f32 %v913_v9, %v1031_v12  ;;  %v923_v18 = vadd.f32 %v922_v16, %v3019_v28 }
 0x1d8   :  { %v1034_v20 = vmul.f32 0.01, %v928_v15 }
 0x1d9   :  { %v1033_v21 = vmul.f32 0.01, %v923_v18  ;;  %v2321_v22 = vpop.f32.mrb[14].mxu1  ;;  %2373 = vmatprep.mubr.msk.f32.mxu0 %vm1120_vm7, %v1063_v17 }
 0x1da   :  { %v938_v23 = vadd.f32 %v2321_v22, %v3019_v28  ;;  %v932_v24 = vpop.f32.mrb[15].mxu1  ;;  %2374 = vmatmul.mubr.msk.f32.gmra.mrb[42].mxu0 %vm1120_vm7, %v1064_v19  ;;  %v1066_v54 = vmax.f32 %v928_v15, %v1034_v20 }
 0x1db   :  { %v1065_v25 = vmax.f32 %v923_v18, %v1033_v21  ;;  %v933_v49 = vadd.f32 %v932_v24, %v3019_v28 }
 0x1dc   :  { %v1036_v26 = vmul.f32 0.01, %v938_v23 }
 0x1dd   :  { %v1035_v8 = vmul.f32 0.01, %v933_v49  ;;  %v2324_v27 = vpop.f32.mrb[16].mxu1  ;;  %2376 = vmatprep.mubr.msk.f32.mxu0 %vm1120_vm7, %v1065_v25 }
 0x1de   :  { %v948_v29 = vadd.f32 %v2324_v27, %v3019_v28  ;;  %v942_v30 = vpop.f32.mrb[17].mxu1  ;;  %2377 = vmatmul.mubr.msk.f32.gmra.mrb[44].mxu0 %vm1120_vm7, %v1066_v54  ;;  %v1068_v13 = vmax.f32 %v938_v23, %v1036_v26 }
 0x1df   :  { %v1067_v31 = vmax.f32 %v933_v49, %v1035_v8  ;;  %v943_v32 = vadd.f32 %v942_v30, %v3019_v28 }
 0x1e0   :  { %v1038_v33 = vmul.f32 0.01, %v948_v29 }
 0x1e1   :  { %v1037_v34 = vmul.f32 0.01, %v943_v32  ;;  %v2327_v43 = vpop.f32.mrb[18].mxu1  ;;  %2379 = vmatprep.mubr.msk.f32.mxu0 %vm1120_vm7, %v1067_v31 }
 0x1e2   :  { %v958_v35 = vadd.f32 %v2327_v43, %v3019_v28  ;;  %v952_v36 = vpop.f32.mrb[19].mxu1  ;;  %2380 = vmatmul.mubr.msk.f32.gmra.mrb[46].mxu0 %vm1120_vm7, %v1068_v13  ;;  %v1070_v42 = vmax.f32 %v948_v29, %v1038_v33 }
 0x1e3   :  { %v1069_v38 = vmax.f32 %v943_v32, %v1037_v34  ;;  %v953_v39 = vadd.f32 %v952_v36, %v3019_v28 }
 0x1e4   :  { %v1040_v44 = vmul.f32 0.01, %v958_v35 }
 0x1e5   :  { %v1039_v45 = vmul.f32 0.01, %v953_v39  ;;  %v2330_v46 = vpop.f32.mrb[20].mxu1  ;;  %2382 = vmatprep.mubr.msk.f32.mxu0 %vm1120_vm7, %v1069_v38 }
 0x1e6   :  { %v968_v48 = vadd.f32 %v2330_v46, %v3019_v28  ;;  %v962_v50 = vpop.f32.mrb[21].mxu1  ;;  %2383 = vmatmul.mubr.msk.f32.gmra.mrb[48].mxu0 %vm1120_vm7, %v1070_v42  ;;  %v1072_v56 = vmax.f32 %v958_v35, %v1040_v44 }
 0x1e7   :  { %v1071_v57 = vmax.f32 %v953_v39, %v1039_v45  ;;  %v963_v51 = vadd.f32 %v962_v50, %v3019_v28 }
 0x1e8   :  { %v1042_v58 = vmul.f32 0.01, %v968_v48 }
 0x1e9   :  { %v1041_v59 = vmul.f32 0.01, %v963_v51  ;;  %v2333_v60 = vpop.f32.mrb[22].mxu1  ;;  %2385 = vmatprep.mubr.msk.f32.mxu0 %vm1120_vm7, %v1071_v57 }
 0x1ea   :  { %v978_v62 = vadd.f32 %v2333_v60, %v3019_v28  ;;  %v972_v63 = vpop.f32.mrb[23].mxu1  ;;  %2386 = vmatmul.mubr.msk.f32.gmra.mrb[50].mxu0 %vm1120_vm7, %v1072_v56  ;;  %v1074_v2 = vmax.f32 %v968_v48, %v1042_v58 }
 0x1eb   :  { %v1073_v0 = vmax.f32 %v963_v51, %v1041_v59  ;;  %v973_v3 = vadd.f32 %v972_v63, %v3019_v28 }
 0x1ec   :  { %v1044_v1 = vmul.f32 0.01, %v978_v62 }
 0x1ed   :  { %v1043_v4 = vmul.f32 0.01, %v973_v3  ;;  %v2336_v5 = vpop.f32.mrb[24].mxu1  ;;  %2388 = vmatprep.mubr.msk.f32.mxu0 %vm1120_vm7, %v1073_v0 }
 0x1ee   :  { %v988_v6 = vadd.f32 %v2336_v5, %v3019_v28  ;;  %v982_v7 = vpop.f32.mrb[25].mxu1  ;;  %2389 = vmatmul.mubr.msk.f32.gmra.mrb[52].mxu0 %vm1120_vm7, %v1074_v2  ;;  %v1076_v11 = vmax.f32 %v978_v62, %v1044_v1 }
 0x1ef   :  { %v1075_v9 = vmax.f32 %v973_v3, %v1043_v4  ;;  %v983_v10 = vadd.f32 %v982_v7, %v3019_v28 }
 0x1f0   :  { %v1046_v12 = vmul.f32 0.01, %v988_v6 }
 0x1f1   :  { %v1045_v14 = vmul.f32 0.01, %v983_v10  ;;  %v2339_v15 = vpop.f32.mrb[26].mxu1  ;;  %2391 = vmatprep.mubr.msk.f32.mxu0 %vm1120_vm7, %v1075_v9 }
 0x1f2   :  { %v998_v16 = vadd.f32 %v2339_v15, %v3019_v28  ;;  %v992_v17 = vpop.f32.mrb[27].mxu1  ;;  %2392 = vmatmul.mubr.msk.f32.gmra.mrb[54].mxu0 %vm1120_vm7, %v1076_v11  ;;  %v1078_v20 = vmax.f32 %v988_v6, %v1046_v12 }
 0x1f3   :  { %v1077_v18 = vmax.f32 %v983_v10, %v1045_v14  ;;  %v993_v19 = vadd.f32 %v992_v17, %v3019_v28 }
 0x1f4   :  { %v1048_v21 = vmul.f32 0.01, %v998_v16 }
 0x1f5   :  { %v1047_v22 = vmul.f32 0.01, %v993_v19  ;;  %v2342_v23 = vpop.f32.mrb[28].mxu1  ;;  %2394 = vmatprep.mubr.msk.f32.mxu0 %vm1120_vm7, %v1077_v18 }
 0x1f6   :  { %v1008_v24 = vadd.f32 %v2342_v23, %v3019_v28  ;;  %v1002_v25 = vpop.f32.mrb[29].mxu1  ;;  %2395 = vmatmul.mubr.msk.f32.gmra.mrb[56].mxu0 %vm1120_vm7, %v1078_v20  ;;  %v1080_v26 = vmax.f32 %v998_v16, %v1048_v21 }
 0x1f7   :  { %v1079_v49 = vmax.f32 %v993_v19, %v1047_v22  ;;  %v1003_v54 = vadd.f32 %v1002_v25, %v3019_v28 }
 0x1f8   :  { %v1050_v8 = vmul.f32 0.01, %v1008_v24 }
 0x1f9   :  { %v1049_v27 = vmul.f32 0.01, %v1003_v54  ;;  %v2345_v29 = vpop.f32.mrb[30].mxu1  ;;  %2397 = vmatprep.mubr.msk.f32.mxu0 %vm1120_vm7, %v1079_v49 }
 0x1fa   :  { %v1018_v30 = vadd.f32 %v2345_v29, %v3019_v28  ;;  %v1012_v31 = vpop.f32.mrb[31].mxu1  ;;  %2398 = vmatmul.mubr.msk.f32.gmra.mrb[58].mxu0 %vm1120_vm7, %v1080_v26  ;;  %v1082_v33 = vmax.f32 %v1008_v24, %v1050_v8 }
 0x1fb   :  { %v1081_v32 = vmax.f32 %v1003_v54, %v1049_v27  ;;  %v1013_v13 = vadd.f32 %v1012_v31, %v3019_v28  ;;  %v3089_v28 = vpop.permute.xlu0 %1117 }
 0x1fc   :  { %v1052_v34 = vmul.f32 0.01, %v1018_v30 }
 0x1fd   :  { %v1051_v43 = vmul.f32 0.01, %v1013_v13  ;;  %2400 = vmatprep.mubr.msk.f32.mxu0 %vm1120_vm7, %v1081_v32 }
 0x1fe   :  { %2401 = vmatmul.mubr.msk.f32.gmra.mrb[60].mxu0 %vm1120_vm7, %v1082_v33  ;;  %v1084_v36 = vmax.f32 %v1018_v30, %v1052_v34 }
 0x1ff   :  { %v1083_v35 = vmax.f32 %v1013_v13, %v1051_v43 }
 0x201   :  { %2403 = vmatprep.mubr.msk.f32.mxu0 %vm1120_vm7, %v1083_v35 }
 0x202   :  { %2404 = vmatmul.mubr.msk.f32.gmra.mrb[62].mxu0 %vm1120_vm7, %v1084_v36 }
 0x299   :  { %v2360_v38 = vpop.f32.mrb[32].mxu0 }
 0x29a   :  { %v1289_v39 = vadd.f32 %v2360_v38, %v3089_v28  ;;  %v1283_v40 = vpop.f32.mrb[33].mxu0 }
 0x29b   :  { %v1284_v41 = vadd.f32 %v1283_v40, %v3089_v28 }
 0x29c   :  { %v1443_v42 = vmul.f32 0.01, %v1289_v39 }
 0x29d   :  { %v1442_v44 = vmul.f32 0.01, %v1284_v41  ;;  %v2363_v45 = vpop.f32.mrb[34].mxu0 }
 0x29e   :  { %v1299_v46 = vadd.f32 %v2363_v45, %v3089_v28  ;;  %v1293_v47 = vpop.f32.mrb[35].mxu0  ;;  %v1475_v52 = vmax.f32 %v1289_v39, %v1443_v42 }
 0x29f   :  { %v1474_v48 = vmax.f32 %v1284_v41, %v1442_v44  ;;  %v1294_v50 = vadd.f32 %v1293_v47, %v3089_v28 }
 0x2a0   :  { %v1445_v57 = vmul.f32 0.01, %v1299_v46 }
 0x2a1   :  { %v1444_v51 = vmul.f32 0.01, %v1294_v50  ;;  %v2366_v53 = vpop.f32.mrb[36].mxu0  ;;  %2414 = vmatprep.mubr.msk.f32.mxu0 %vm666_vm6, %v1474_v48 }
 0x2a2   :  { %v1309_v55 = vadd.f32 %v2366_v53, %v3089_v28  ;;  %v1303_v56 = vpop.f32.mrb[37].mxu0  ;;  %2415 = vmatmul.mubr.msk.f32.vlgmr.msra.gmra.mrb[64].mxu0 %vm666_vm6, %v1475_v52  ;;  %v1477_v60 = vmax.f32 %v1299_v46, %v1445_v57 }
 0x2a3   :  { %v1476_v58 = vmax.f32 %v1294_v50, %v1444_v51  ;;  %v1304_v59 = vadd.f32 %v1303_v56, %v3089_v28 }
 0x2a4   :  { %v1447_v61 = vmul.f32 0.01, %v1309_v55 }
 0x2a5   :  { %v1446_v62 = vmul.f32 0.01, %v1304_v59  ;;  %v2369_v63 = vpop.f32.mrb[38].mxu0  ;;  %2417 = vmatprep.mubr.msk.f32.mxu1 %vm666_vm6, %v1476_v58 }
 0x2a6   :  { %v1319_v0 = vadd.f32 %v2369_v63, %v3089_v28  ;;  %v1313_v3 = vpop.f32.mrb[39].mxu0  ;;  %2418 = vmatmul.mubr.msk.f32.vlgmr.msra.gmra.mrb[32].mxu1 %vm666_vm6, %v1477_v60  ;;  %v1479_v4 = vmax.f32 %v1309_v55, %v1447_v61 }
 0x2a7   :  { %v1478_v2 = vmax.f32 %v1304_v59, %v1446_v62  ;;  %v1314_v1 = vadd.f32 %v1313_v3, %v3089_v28 }
 0x2a8   :  { %v1449_v5 = vmul.f32 0.01, %v1319_v0 }
 0x2a9   :  { %v1448_v6 = vmul.f32 0.01, %v1314_v1  ;;  %v2372_v7 = vpop.f32.mrb[40].mxu0  ;;  %2420 = vmatprep.mubr.msk.f32.mxu1 %vm666_vm6, %v1478_v2 }
 0x2aa   :  { %v1329_v9 = vadd.f32 %v2372_v7, %v3089_v28  ;;  %v1323_v10 = vpop.f32.mrb[41].mxu0  ;;  %2421 = vmatmul.mubr.msk.f32.gmra.mrb[34].mxu1 %vm666_vm6, %v1479_v4  ;;  %v1481_v14 = vmax.f32 %v1319_v0, %v1449_v5 }
 0x2ab   :  { %v1480_v11 = vmax.f32 %v1314_v1, %v1448_v6  ;;  %v1324_v12 = vadd.f32 %v1323_v10, %v3089_v28 }
 0x2ac   :  { %v1451_v15 = vmul.f32 0.01, %v1329_v9 }
 0x2ad   :  { %v1450_v16 = vmul.f32 0.01, %v1324_v12  ;;  %v2375_v17 = vpop.f32.mrb[42].mxu0  ;;  %2423 = vmatprep.mubr.msk.f32.mxu1 %vm666_vm6, %v1480_v11 }
 0x2ae   :  { %v1339_v18 = vadd.f32 %v2375_v17, %v3089_v28  ;;  %v1333_v19 = vpop.f32.mrb[43].mxu0  ;;  %2424 = vmatmul.mubr.msk.f32.gmra.mrb[36].mxu1 %vm666_vm6, %v1481_v14  ;;  %v1483_v22 = vmax.f32 %v1329_v9, %v1451_v15 }
 0x2af   :  { %v1482_v20 = vmax.f32 %v1324_v12, %v1450_v16  ;;  %v1334_v21 = vadd.f32 %v1333_v19, %v3089_v28 }
 0x2b0   :  { %v1453_v23 = vmul.f32 0.01, %v1339_v18 }
 0x2b1   :  { %v1452_v24 = vmul.f32 0.01, %v1334_v21  ;;  %v2378_v25 = vpop.f32.mrb[44].mxu0  ;;  %2426 = vmatprep.mubr.msk.f32.mxu1 %vm666_vm6, %v1482_v20 }
 0x2b2   :  { %v1349_v49 = vadd.f32 %v2378_v25, %v3089_v28  ;;  %v1343_v54 = vpop.f32.mrb[45].mxu0  ;;  %2427 = vmatmul.mubr.msk.f32.gmra.mrb[38].mxu1 %vm666_vm6, %v1483_v22  ;;  %v1485_v27 = vmax.f32 %v1339_v18, %v1453_v23 }
 0x2b3   :  { %v1484_v26 = vmax.f32 %v1334_v21, %v1452_v24  ;;  %v1344_v8 = vadd.f32 %v1343_v54, %v3089_v28 }
 0x2b4   :  { %v1455_v29 = vmul.f32 0.01, %v1349_v49 }
 0x2b5   :  { %v1454_v30 = vmul.f32 0.01, %v1344_v8  ;;  %v2381_v31 = vpop.f32.mrb[46].mxu0  ;;  %2429 = vmatprep.mubr.msk.f32.mxu1 %vm666_vm6, %v1484_v26 }
 0x2b6   :  { %v1359_v32 = vadd.f32 %v2381_v31, %v3089_v28  ;;  %v1353_v13 = vpop.f32.mrb[47].mxu0  ;;  %2430 = vmatmul.mubr.msk.f32.gmra.mrb[40].mxu1 %vm666_vm6, %v1485_v27  ;;  %v1487_v43 = vmax.f32 %v1349_v49, %v1455_v29 }
 0x2b7   :  { %v1486_v33 = vmax.f32 %v1344_v8, %v1454_v30  ;;  %v1354_v34 = vadd.f32 %v1353_v13, %v3089_v28 }
 0x2b8   :  { %v1457_v35 = vmul.f32 0.01, %v1359_v32 }
 0x2b9   :  { %v1456_v36 = vmul.f32 0.01, %v1354_v34  ;;  %v2384_v37 = vpop.f32.mrb[48].mxu0  ;;  %2432 = vmatprep.mubr.msk.f32.mxu1 %vm666_vm6, %v1486_v33 }
 0x2ba   :  { %v1369_v38 = vadd.f32 %v2384_v37, %v3089_v28  ;;  %v1363_v39 = vpop.f32.mrb[49].mxu0  ;;  %2433 = vmatmul.mubr.msk.f32.gmra.mrb[42].mxu1 %vm666_vm6, %v1487_v43  ;;  %v1489_v42 = vmax.f32 %v1359_v32, %v1457_v35 }
 0x2bb   :  { %v1488_v40 = vmax.f32 %v1354_v34, %v1456_v36  ;;  %v1364_v41 = vadd.f32 %v1363_v39, %v3089_v28 }
 0x2bc   :  { %v1459_v44 = vmul.f32 0.01, %v1369_v38 }
 0x2bd   :  { %v1458_v45 = vmul.f32 0.01, %v1364_v41  ;;  %v2387_v46 = vpop.f32.mrb[50].mxu0  ;;  %2435 = vmatprep.mubr.msk.f32.mxu1 %vm666_vm6, %v1488_v40  ;;  %v3155_v40 = vpop.permute.xlu0 %1528 }
 0x2be   :  { %v1379_v47 = vadd.f32 %v2387_v46, %v3089_v28  ;;  %v1373_v48 = vpop.f32.mrb[51].mxu0  ;;  %2436 = vmatmul.mubr.msk.f32.gmra.mrb[44].mxu1 %vm666_vm6, %v1489_v42  ;;  %v1491_v57 = vmax.f32 %v1369_v38, %v1459_v44 }
 0x2bf   :  { %v1490_v50 = vmax.f32 %v1364_v41, %v1458_v45  ;;  %v1374_v52 = vadd.f32 %v1373_v48, %v3089_v28 }
 0x2c0   :  { %v1461_v51 = vmul.f32 0.01, %v1379_v47 }
 0x2c1   :  { %v1460_v53 = vmul.f32 0.01, %v1374_v52  ;;  %v2390_v55 = vpop.f32.mrb[52].mxu0  ;;  %2438 = vmatprep.mubr.msk.f32.mxu1 %vm666_vm6, %v1490_v50 }
 0x2c2   :  { %v1389_v56 = vadd.f32 %v2390_v55, %v3089_v28  ;;  %v1383_v58 = vpop.f32.mrb[53].mxu0  ;;  %2439 = vmatmul.mubr.msk.f32.gmra.mrb[46].mxu1 %vm666_vm6, %v1491_v57  ;;  %v1493_v61 = vmax.f32 %v1379_v47, %v1461_v51 }
 0x2c3   :  { %v1492_v59 = vmax.f32 %v1374_v52, %v1460_v53  ;;  %v1384_v60 = vadd.f32 %v1383_v58, %v3089_v28 }
 0x2c4   :  { %v1463_v62 = vmul.f32 0.01, %v1389_v56 }
 0x2c5   :  { %v1462_v63 = vmul.f32 0.01, %v1384_v60  ;;  %v2393_v0 = vpop.f32.mrb[54].mxu0  ;;  %2441 = vmatprep.mubr.msk.f32.mxu1 %vm666_vm6, %v1492_v59 }
 0x2c6   :  { %v1399_v3 = vadd.f32 %v2393_v0, %v3089_v28  ;;  %v1393_v2 = vpop.f32.mrb[55].mxu0  ;;  %2442 = vmatmul.mubr.msk.f32.gmra.mrb[48].mxu1 %vm666_vm6, %v1493_v61  ;;  %v1495_v5 = vmax.f32 %v1389_v56, %v1463_v62 }
 0x2c7   :  { %v1494_v1 = vmax.f32 %v1384_v60, %v1462_v63  ;;  %v1394_v4 = vadd.f32 %v1393_v2, %v3089_v28 }
 0x2c8   :  { %v1465_v6 = vmul.f32 0.01, %v1399_v3 }
 0x2c9   :  { %v1464_v7 = vmul.f32 0.01, %v1394_v4  ;;  %v2396_v9 = vpop.f32.mrb[56].mxu0  ;;  %2444 = vmatprep.mubr.msk.f32.mxu1 %vm666_vm6, %v1494_v1 }
 0x2ca   :  { %v1409_v10 = vadd.f32 %v2396_v9, %v3089_v28  ;;  %v1403_v11 = vpop.f32.mrb[57].mxu0  ;;  %2445 = vmatmul.mubr.msk.f32.gmra.mrb[50].mxu1 %vm666_vm6, %v1495_v5  ;;  %v1497_v15 = vmax.f32 %v1399_v3, %v1465_v6 }
 0x2cb   :  { %v1496_v12 = vmax.f32 %v1394_v4, %v1464_v7  ;;  %v1404_v14 = vadd.f32 %v1403_v11, %v3089_v28 }
 0x2cc   :  { %v1467_v16 = vmul.f32 0.01, %v1409_v10 }
 0x2cd   :  { %v1466_v17 = vmul.f32 0.01, %v1404_v14  ;;  %v2399_v18 = vpop.f32.mrb[58].mxu0  ;;  %2447 = vmatprep.mubr.msk.f32.mxu1 %vm666_vm6, %v1496_v12 }
 0x2ce   :  { %v1419_v19 = vadd.f32 %v2399_v18, %v3089_v28  ;;  %v1413_v20 = vpop.f32.mrb[59].mxu0  ;;  %2448 = vmatmul.mubr.msk.f32.gmra.mrb[52].mxu1 %vm666_vm6, %v1497_v15  ;;  %v1499_v23 = vmax.f32 %v1409_v10, %v1467_v16 }
 0x2cf   :  { %v1498_v21 = vmax.f32 %v1404_v14, %v1466_v17  ;;  %v1414_v22 = vadd.f32 %v1413_v20, %v3089_v28 }
 0x2d0   :  { %v1469_v24 = vmul.f32 0.01, %v1419_v19 }
 0x2d1   :  { %v1468_v25 = vmul.f32 0.01, %v1414_v22  ;;  %v2402_v49 = vpop.f32.mrb[60].mxu0  ;;  %2450 = vmatprep.mubr.msk.f32.mxu1 %vm666_vm6, %v1498_v21 }
 0x2d2   :  { %v1429_v54 = vadd.f32 %v2402_v49, %v3089_v28  ;;  %v1423_v26 = vpop.f32.mrb[61].mxu0  ;;  %2451 = vmatmul.mubr.msk.f32.gmra.mrb[54].mxu1 %vm666_vm6, %v1499_v23  ;;  %v1501_v29 = vmax.f32 %v1419_v19, %v1469_v24 }
 0x2d3   :  { %v1500_v8 = vmax.f32 %v1414_v22, %v1468_v25  ;;  %v1424_v27 = vadd.f32 %v1423_v26, %v3089_v28 }
 0x2d4   :  { %v1471_v30 = vmul.f32 0.01, %v1429_v54 }
 0x2d5   :  { %v1470_v31 = vmul.f32 0.01, %v1424_v27  ;;  %v2405_v32 = vpop.f32.mrb[62].mxu0  ;;  %2453 = vmatprep.mubr.msk.f32.mxu1 %vm666_vm6, %v1500_v8 }
 0x2d6   :  { %v1439_v13 = vadd.f32 %v2405_v32, %v3089_v28  ;;  %v1433_v33 = vpop.f32.mrb[63].mxu0  ;;  %2454 = vmatmul.mubr.msk.f32.gmra.mrb[56].mxu1 %vm666_vm6, %v1501_v29  ;;  %v1503_v35 = vmax.f32 %v1429_v54, %v1471_v30 }
 0x2d7   :  { %v1502_v34 = vmax.f32 %v1424_v27, %v1470_v31  ;;  %v1434_v43 = vadd.f32 %v1433_v33, %v3089_v28 }
 0x2d8   :  { %v1473_v36 = vmul.f32 0.01, %v1439_v13 }
 0x2d9   :  { %v1472_v37 = vmul.f32 0.01, %v1434_v43  ;;  %2456 = vmatprep.mubr.msk.f32.mxu1 %vm666_vm6, %v1502_v34 }
 0x2da   :  { %2457 = vmatmul.mubr.msk.f32.gmra.mrb[58].mxu1 %vm666_vm6, %v1503_v35  ;;  %v1505_v39 = vmax.f32 %v1439_v13, %v1473_v36 }
 0x2db   :  { %v1504_v38 = vmax.f32 %v1434_v43, %v1472_v37 }
 0x2dd   :  { %2459 = vmatprep.mubr.msk.f32.mxu1 %vm666_vm6, %v1504_v38 }
 0x2de   :  { %2460 = vmatmul.mubr.msk.f32.gmra.mrb[60].mxu1 %vm666_vm6, %v1505_v39 }
 0x375   :  { %v2416_v41 = vpop.f32.mrb[64].mxu0 }
 0x376   :  { %v1693_v42 = vpop.f32.mrb[65].mxu0  ;;  %v1699_v46 = vadd.f32 %v2416_v41, %v3155_v40 }
 0x377   :  { %v1694_v44 = vadd.f32 %v1693_v42, %v3155_v40 }
 0x379   :  { %v2419_v28 = vpop.f32.mrb[32].mxu1  ;;  %1852 = vxpose.xlu1.b32.start [1/16] (narrow) %v1694_v44, 8 }
 0x37a   :  { %v1703_v45 = vpop.f32.mrb[33].mxu1  ;;  %v1709_v51 = vadd.f32 %v2419_v28, %v3155_v40 }
 0x37b   :  { %v1704_v50 = vadd.f32 %v1703_v45, %v3155_v40 }
 0x37d   :  { %v2422_v47 = vpop.f32.mrb[34].mxu1  ;;  %1853 = vxpose.xlu1.b32.cont [2/16] (narrow) %v1699_v46, 8 }
 0x37e   :  { %v1713_v48 = vpop.f32.mrb[35].mxu1  ;;  %v1719_v60 = vadd.f32 %v2422_v47, %v3155_v40 }
 0x37f   :  { %v1714_v56 = vadd.f32 %v1713_v48, %v3155_v40 }
 0x381   :  { %v2425_v52 = vpop.f32.mrb[36].mxu1  ;;  %1854 = vxpose.xlu1.b32.cont [3/16] (narrow) %v1704_v50, 8 }
 0x382   :  { %v1723_v57 = vpop.f32.mrb[37].mxu1  ;;  %v1729_v2 = vadd.f32 %v2425_v52, %v3155_v40 }
 0x383   :  { %v1724_v63 = vadd.f32 %v1723_v57, %v3155_v40 }
 0x385   :  { %v2428_v53 = vpop.f32.mrb[38].mxu1  ;;  %1855 = vxpose.xlu1.b32.cont [4/16] (narrow) %v1709_v51, 8 }
 0x386   :  { %v1733_v55 = vpop.f32.mrb[39].mxu1  ;;  %v1739_v10 = vadd.f32 %v2428_v53, %v3155_v40 }
 0x387   :  { %v1734_v5 = vadd.f32 %v1733_v55, %v3155_v40 }
 0x389   :  { %v2431_v58 = vpop.f32.mrb[40].mxu1  ;;  %1856 = vxpose.xlu1.b32.cont [5/16] (narrow) %v1714_v56, 8 }
 0x38a   :  { %v1743_v59 = vpop.f32.mrb[41].mxu1  ;;  %v1749_v19 = vadd.f32 %v2431_v58, %v3155_v40 }
 0x38b   :  { %v1744_v15 = vadd.f32 %v1743_v59, %v3155_v40 }
 0x38d   :  { %v2434_v61 = vpop.f32.mrb[42].mxu1  ;;  %1857 = vxpose.xlu1.b32.cont [6/16] (narrow) %v1719_v60, 8 }
 0x38e   :  { %v1753_v62 = vpop.f32.mrb[43].mxu1  ;;  %v1759_v54 = vadd.f32 %v2434_v61, %v3155_v40 }
 0x38f   :  { %v1754_v23 = vadd.f32 %v1753_v62, %v3155_v40 }
 0x391   :  { %v2437_v0 = vpop.f32.mrb[44].mxu1  ;;  %1858 = vxpose.xlu1.b32.cont [7/16] (narrow) %v1724_v63, 8 }
 0x392   :  { %v1763_v3 = vpop.f32.mrb[45].mxu1  ;;  %v1769_v13 = vadd.f32 %v2437_v0, %v3155_v40 }
 0x393   :  { %v1764_v29 = vadd.f32 %v1763_v3, %v3155_v40 }
 0x395   :  { %v2440_v1 = vpop.f32.mrb[46].mxu1  ;;  %1859 = vxpose.xlu1.b32.cont [8/16] (narrow) %v1729_v2, 8 }
 0x396   :  { %v1773_v4 = vpop.f32.mrb[47].mxu1  ;;  %v1779_v11 = vadd.f32 %v2440_v1, %v3155_v40 }
 0x397   :  { %v1774_v6 = vadd.f32 %v1773_v4, %v3155_v40 }
 0x399   :  { %v2443_v7 = vpop.f32.mrb[48].mxu1  ;;  %1884 = vxpose.xlu0.b32.start [1/16] (narrow) %v1774_v6, 8  ;;  %1860 = vxpose.xlu1.b32.cont [9/16] (narrow) %v1734_v5, 8 }
 0x39a   :  { %v1783_v9 = vpop.f32.mrb[49].mxu1  ;;  %v1789_v20 = vadd.f32 %v2443_v7, %v3155_v40 }
 0x39b   :  { %v1784_v16 = vadd.f32 %v1783_v9, %v3155_v40 }
 0x39d   :  { %v2446_v12 = vpop.f32.mrb[50].mxu1  ;;  %1885 = vxpose.xlu0.b32.cont [2/16] (narrow) %v1779_v11, 8  ;;  %1861 = vxpose.xlu1.b32.cont [10/16] (narrow) %v1739_v10, 8 }
 0x39e   :  { %v1793_v14 = vpop.f32.mrb[51].mxu1  ;;  %v1799_v26 = vadd.f32 %v2446_v12, %v3155_v40 }
 0x39f   :  { %v1794_v24 = vadd.f32 %v1793_v14, %v3155_v40 }
 0x3a1   :  { %v2449_v17 = vpop.f32.mrb[52].mxu1  ;;  %1886 = vxpose.xlu0.b32.cont [3/16] (narrow) %v1784_v16, 8  ;;  %1862 = vxpose.xlu1.b32.cont [11/16] (narrow) %v1744_v15, 8 }
 0x3a2   :  { %v1803_v18 = vpop.f32.mrb[53].mxu1  ;;  %v1809_v33 = vadd.f32 %v2449_v17, %v3155_v40 }
 0x3a3   :  { %v1804_v30 = vadd.f32 %v1803_v18, %v3155_v40 }
 0x3a5   :  { %v2452_v21 = vpop.f32.mrb[54].mxu1  ;;  %1887 = vxpose.xlu0.b32.cont [4/16] (narrow) %v1789_v20, 8  ;;  %1863 = vxpose.xlu1.b32.cont [12/16] (narrow) %v1749_v19, 8 }
 0x3a6   :  { %v1813_v22 = vpop.f32.mrb[55].mxu1  ;;  %v1819_v43 = vadd.f32 %v2452_v21, %v3155_v40 }
 0x3a7   :  { %v1814_v34 = vadd.f32 %v1813_v22, %v3155_v40 }
 0x3a9   :  { %v2455_v25 = vpop.f32.mrb[56].mxu1  ;;  %1888 = vxpose.xlu0.b32.cont [5/16] (narrow) %v1794_v24, 8  ;;  %1864 = vxpose.xlu1.b32.cont [13/16] (narrow) %v1754_v23, 8 }
 0x3aa   :  { %v1823_v49 = vpop.f32.mrb[57].mxu1  ;;  %v1829_v36 = vadd.f32 %v2455_v25, %v3155_v40 }
 0x3ab   :  { %v1824_v35 = vadd.f32 %v1823_v49, %v3155_v40 }
 0x3ad   :  { %v2458_v8 = vpop.f32.mrb[58].mxu1  ;;  %1889 = vxpose.xlu0.b32.cont [6/16] (narrow) %v1799_v26, 8  ;;  %1865 = vxpose.xlu1.b32.cont [14/16] (narrow) %v1759_v54, 8 }
 0x3ae   :  { %v1833_v27 = vpop.f32.mrb[59].mxu1  ;;  %v1839_v38 = vadd.f32 %v2458_v8, %v3155_v40 }
 0x3af   :  { %v1834_v37 = vadd.f32 %v1833_v27, %v3155_v40 }
 0x3b1   :  { %v2461_v31 = vpop.f32.mrb[60].mxu1  ;;  %1890 = vxpose.xlu0.b32.cont [7/16] (narrow) %v1804_v30, 8  ;;  %1866 = vxpose.xlu1.b32.cont [15/16] (narrow) %v1764_v29, 8 }
 0x3b2   :  { %v1843_v32 = vpop.f32.mrb[61].mxu1  ;;  %v1849_v41 = vadd.f32 %v2461_v31, %v3155_v40 }
 0x3b3   :  { %v1844_v39 = vadd.f32 %v1843_v32, %v3155_v40 }
 0x3b5   :  { %1891 = vxpose.xlu0.b32.cont [8/16] (narrow) %v1809_v33, 8  ;;  %1867 = vxpose.xlu1.b32.end [16/16] (narrow) %v1769_v13, 8 }
 0x3b9   :  { %1892 = vxpose.xlu0.b32.cont [9/16] (narrow) %v1814_v34, 8 }
 0x3bd   :  { %1893 = vxpose.xlu0.b32.cont [10/16] (narrow) %v1819_v43, 8 }
 0x3c1   :  { %1894 = vxpose.xlu0.b32.cont [11/16] (narrow) %v1824_v35, 8 }
 0x3c5   :  { %1895 = vxpose.xlu0.b32.cont [12/16] (narrow) %v1829_v36, 8 }
 0x3c9   :  { %1896 = vxpose.xlu0.b32.cont [13/16] (narrow) %v1834_v37, 8 }
 0x3cd   :  { %1897 = vxpose.xlu0.b32.cont [14/16] (narrow) %v1839_v38, 8 }
 0x3d1   :  { %1898 = vxpose.xlu0.b32.cont [15/16] (narrow) %v1844_v39, 8 }
 0x3d5   :  { %1899 = vxpose.xlu0.b32.end [16/16] (narrow) %v1849_v41, 8 }
 0x3f9   :  { %v1868_v42 = vpop.trf.xlu1 }
 0x3fa   :  { %1916 = vst [vmem:[#allocation2] sm:$0xff] %v1868_v42 }
 0x419   :  { %v1900_v44 = vpop.trf.xlu0 }
 0x41a   :  { %1917 = vst [vmem:[#allocation2 + $0x8] sm:$0xff] %v1900_v44 }
 0x41b   :  { %2618 = shalt.err (!%p2615_p4)
}
 0x41c   :  { %s2619_s28 = scalar_lea.hbm %s3203_s2, 256 }
 0x41d   :  { %p2620_p5 = scmp.ne.s32.totalorder %s3203_s2, %s2619_s28  ;;  %p2623_p6 = scmp.lt.u32.totalorder %s2619_s28, %s3203_s2 }
 0x41f   :  { %p2625_p7 = pnand %p2623_p6, %p2620_p5 }
 0x421   :  { %2628 = shalt.err (!%p2625_p7)
}
 0x422   :  { %1927 = dma.vmem_to_hbm [thread:$0]  %s1925_s24, 256, %s3203_s2, [#allocation3]  }
 0x423   :  { %2629 = dma.done.wait [#allocation3], 256  }
 0x424   :  { %2630 = vsyncadd [#allocation3], 4294967040 }
 0x425   :  { %1931 = vsyncpa [#allocation3], 1 }

</bundles_post_ra>
